<compile_context>
chip_gen: v7x
topology: tpu7x:2x2x1
jax: 0.10.0
libtpu: 0.0.40
codegen_flags: <defaults>
</compile_context>

<pallas_src>
import functools

import jax
import jax.numpy as jnp
from jax.experimental import pallas as pl
from jax.experimental.pallas import tpu as pltpu


def _fused_lstm_kernel(*refs, B, T, H, L):
    """Fused multi-layer LSTM forward, single invocation.

    refs layout:
      refs[0]            : x_ref          (B, T, D)        batch_first input
      refs[1 + 3k + 0]   : W_ih^T layer k (D_in, 4H)
      refs[1 + 3k + 1]   : W_hh^T layer k (H, 4H)
      refs[1 + 3k + 2]   : bias layer k   (1, 4H)          (= b_ih + b_hh)
      refs[1 + 3L]       : out_ref        (B, T, H)        top-layer hidden states
      refs[1 + 3L + 1]   : gx_scr         (B, T, 4H) VMEM  hoisted layer-0 input projection
    """
    x_ref = refs[0]
    w_refs = refs[1:1 + 3 * L]
    out_ref = refs[1 + 3 * L]
    gx_scr = refs[1 + 3 * L + 1]

    # Load all weights / biases into vregs once (they are tiny and reused every step).
    wih0 = w_refs[0][...]                                   # (D, 4H)
    bias = [w_refs[3 * l + 2][...] for l in range(L)]        # each (1, 4H)
    whh_t = [w_refs[3 * l + 1][...] for l in range(L)]       # each (H, 4H)
    wih_t = [None] + [w_refs[3 * l + 0][...] for l in range(1, L)]   # layers >= 1: (H, 4H)

    # Hoisted layer-0 input projection + bias for ALL timesteps (off the critical path):
    #   (T, D) @ (D, 4H) per batch row  ->  gx_scr[b] = (T, 4H)
    for b in range(B):
        gx_scr[b] = (
            jnp.dot(x_ref[b], wih0, preferred_element_type=jnp.float32) + bias[0]
        )

    # init_hidden(): hidden = 0, cell = zeros + 1   (for every layer)
    h = [jnp.zeros((B, H), jnp.float32) for _ in range(L)]
    c = [jnp.ones((B, H), jnp.float32) for _ in range(L)]

    def lstm_cell(gates, c_prev):
        # Full-width activations (one sigmoid + one tanh over the lane-dense 4H vector),
        # then static lane slices for the i/f/g/o gates.
        sig = jax.nn.sigmoid(gates)
        tah = jnp.tanh(gates)
        i = sig[:, 0 * H:1 * H]
        f = sig[:, 1 * H:2 * H]
        g = tah[:, 2 * H:3 * H]
        o = sig[:, 3 * H:4 * H]
        c_new = f * c_prev + i * g
        h_new = o * jnp.tanh(c_new)
        return h_new, c_new

    # Serial recurrence over time, layers interleaved per timestep so independent chains
    # (layer l step t  vs  layer l-1 step t+1) can overlap.  T is small -> fully unrolled,
    # static indexing only.
    for t in range(T):
        for l in range(L):
            if l == 0:
                gate_x = gx_scr[:, t:t + 1, :].reshape(B, 4 * H)
            else:
                # Per-step input projection from the just-computed lower-layer hidden state.
                gate_x = (
                    jnp.dot(h[l - 1], wih_t[l], preferred_element_type=jnp.float32)
                    + bias[l]
                )
            gates = gate_x + jnp.dot(h[l], whh_t[l],
                                     preferred_element_type=jnp.float32)
            h[l], c[l] = lstm_cell(gates, c[l])

        # Top-layer hidden state for this timestep goes straight into the output block
        # (VMEM-resident; written back to HBM once when the kernel finishes).
        out_ref[:, t:t + 1, :] = h[L - 1][:, None, :].astype(out_ref.dtype)


@jax.jit
def model_lstm_forward(x_btd, params):
    """x_btd: (B, T, input_size) batch_first. params: list of (W_ih, W_hh, bias) per layer
    in PyTorch layout (W_ih: (4H, D_in), W_hh: (4H, H), bias = b_ih + b_hh: (4H,))."""
    B, T, D = x_btd.shape
    H = params[0][1].shape[1]
    L = len(params)

    args = [x_btd.astype(jnp.float32)]
    in_specs = [pl.BlockSpec((B, T, D), lambda i: (0, 0, 0))]
    for (wih, whh, bias) in params:
        d_in = wih.shape[1]
        args += [
            jnp.transpose(wih).astype(jnp.float32),       # (D_in, 4H)  pre-transposed
            jnp.transpose(whh).astype(jnp.float32),       # (H, 4H)     pre-transposed
            bias.reshape(1, 4 * H).astype(jnp.float32),   # (1, 4H)
        ]
        in_specs += [
            pl.BlockSpec((d_in, 4 * H), lambda i: (0, 0)),
            pl.BlockSpec((H, 4 * H), lambda i: (0, 0)),
            pl.BlockSpec((1, 4 * H), lambda i: (0, 0)),
        ]

    kernel = functools.partial(_fused_lstm_kernel, B=B, T=T, H=H, L=L)

    return pl.pallas_call(
        kernel,
        out_shape=jax.ShapeDtypeStruct((B, T, H), jnp.float32),
        grid_spec=pltpu.PrefetchScalarGridSpec(
            num_scalar_prefetch=0,
            grid=(1,),                                    # single kernel invocation
            in_specs=in_specs,
            out_specs=pl.BlockSpec((B, T, H), lambda i: (0, 0, 0)),
            scratch_shapes=[
                pltpu.VMEM((B, T, 4 * H), jnp.float32),   # hoisted layer-0 gate projection
            ],
        ),
        compiler_params=pltpu.CompilerParams(
            dimension_semantics=("arbitrary",),
        ),
    )(*args)


def lstm_reference(x_btd, params):
    """Pure-JAX reference (same math) used only for a correctness check."""
    h_all = x_btd
    B = x_btd.shape[0]
    for (wih, whh, bias) in params:
        H = whh.shape[1]

        def step(carry, xt, wih=wih, whh=whh, bias=bias, H=H):
            h, c = carry
            gates = xt @ wih.T + h @ whh.T + bias
            i = jax.nn.sigmoid(gates[:, :H])
            f = jax.nn.sigmoid(gates[:, H:2 * H])
            g = jnp.tanh(gates[:, 2 * H:3 * H])
            o = jax.nn.sigmoid(gates[:, 3 * H:])
            c = f * c + i * g
            h = o * jnp.tanh(c)
            return (h, c), h

        h0 = jnp.zeros((B, H), jnp.float32)
        c0 = jnp.ones((B, H), jnp.float32)
        _, ys = jax.lax.scan(step, (h0, c0), jnp.swapaxes(h_all, 0, 1))
        h_all = jnp.swapaxes(ys, 0, 1)
    return h_all


def init_lstm_params(key, input_size, hidden_dim, n_layers):
    """Deterministic init mirroring PyTorch nn.LSTM shapes: uniform(-1/sqrt(H), 1/sqrt(H))."""
    params = []
    bound = 1.0 / jnp.sqrt(jnp.float32(hidden_dim))
    for layer in range(n_layers):
        d_in = input_size if layer == 0 else hidden_dim
        key, k1, k2, k3, k4 = jax.random.split(key, 5)
        wih = jax.random.uniform(k1, (4 * hidden_dim, d_in), jnp.float32, -bound, bound)
        whh = jax.random.uniform(k2, (4 * hidden_dim, hidden_dim), jnp.float32, -bound, bound)
        b_ih = jax.random.uniform(k3, (4 * hidden_dim,), jnp.float32, -bound, bound)
        b_hh = jax.random.uniform(k4, (4 * hidden_dim,), jnp.float32, -bound, bound)
        params.append((wih, whh, b_ih + b_hh))
    return params


if __name__ == "__main__":
    # model_lstm(input_size=16, hidden_dim=32, n_layers=2, dropout=0.0, bidirectional=False)
    B, T, D, H, L = 2, 8, 16, 32, 2

    key = jax.random.PRNGKey(0)
    key, kx = jax.random.split(key)
    x = jax.random.normal(kx, (B, T, D), dtype=jnp.float32)

    params = init_lstm_params(key, D, H, L)

    out = jax.block_until_ready(model_lstm_forward(x, params))
    assert out.shape == (B, T, H), out.shape

    ref = jax.block_until_ready(lstm_reference(x, params))
    assert jnp.allclose(out, ref, atol=1e-4, rtol=1e-4), float(jnp.abs(out - ref).max())

    print("KERNEL_OK")
</pallas_src>

<mosaic_0001>
module attributes {stable_mosaic.version = 11 : i64} {
  func.func @_fused_lstm_kernel(%arg0: i32, %arg1: memref<2x8x16xf32, #tpu.memory_space<vmem>>, %arg2: memref<16x128xf32, #tpu.memory_space<vmem>>, %arg3: memref<32x128xf32, #tpu.memory_space<vmem>>, %arg4: memref<1x128xf32, #tpu.memory_space<vmem>>, %arg5: memref<32x128xf32, #tpu.memory_space<vmem>>, %arg6: memref<32x128xf32, #tpu.memory_space<vmem>>, %arg7: memref<1x128xf32, #tpu.memory_space<vmem>>, %arg8: memref<2x8x32xf32, #tpu.memory_space<vmem>>, %arg9: memref<2x8x128xf32, #tpu.memory_space<vmem>>) attributes {dimension_semantics = [#tpu.dimension_semantics<arbitrary>], iteration_bounds = array<i64: 1>, scalar_prefetch = 0 : i64, scratch_operands = 1 : i64, tpu.core_type = #tpu.core_type<tc>, window_params = [{pipeline_mode = #tpu.pipeline_mode<synchronous>, transform_indices = @transform_0, window_bounds = array<i64: 2, 8, 16>}, {pipeline_mode = #tpu.pipeline_mode<synchronous>, transform_indices = @transform_1, window_bounds = array<i64: 16, 128>}, {pipeline_mode = #tpu.pipeline_mode<synchronous>, transform_indices = @transform_2, window_bounds = array<i64: 32, 128>}, {pipeline_mode = #tpu.pipeline_mode<synchronous>, transform_indices = @transform_3, window_bounds = array<i64: 1, 128>}, {pipeline_mode = #tpu.pipeline_mode<synchronous>, transform_indices = @transform_4, window_bounds = array<i64: 32, 128>}, {pipeline_mode = #tpu.pipeline_mode<synchronous>, transform_indices = @transform_5, window_bounds = array<i64: 32, 128>}, {pipeline_mode = #tpu.pipeline_mode<synchronous>, transform_indices = @transform_6, window_bounds = array<i64: 1, 128>}, {pipeline_mode = #tpu.pipeline_mode<synchronous>, transform_indices = @transform_7, window_bounds = array<i64: 2, 8, 32>}]} {
    %c0 = arith.constant 0 : index
    %c0_0 = arith.constant 0 : index
    %0 = vector.load %arg2[%c0, %c0_0] : memref<16x128xf32, #tpu.memory_space<vmem>>, vector<16x128xf32>
    %c0_1 = arith.constant 0 : index
    %c0_2 = arith.constant 0 : index
    %1 = vector.load %arg4[%c0_1, %c0_2] : memref<1x128xf32, #tpu.memory_space<vmem>>, vector<1x128xf32>
    %c0_3 = arith.constant 0 : index
    %c0_4 = arith.constant 0 : index
    %2 = vector.load %arg7[%c0_3, %c0_4] : memref<1x128xf32, #tpu.memory_space<vmem>>, vector<1x128xf32>
    %c0_5 = arith.constant 0 : index
    %c0_6 = arith.constant 0 : index
    %3 = vector.load %arg3[%c0_5, %c0_6] : memref<32x128xf32, #tpu.memory_space<vmem>>, vector<32x128xf32>
    %c0_7 = arith.constant 0 : index
    %c0_8 = arith.constant 0 : index
    %4 = vector.load %arg6[%c0_7, %c0_8] : memref<32x128xf32, #tpu.memory_space<vmem>>, vector<32x128xf32>
    %c0_9 = arith.constant 0 : index
    %c0_10 = arith.constant 0 : index
    %5 = vector.load %arg5[%c0_9, %c0_10] : memref<32x128xf32, #tpu.memory_space<vmem>>, vector<32x128xf32>
    %c0_11 = arith.constant 0 : index
    %c0_12 = arith.constant 0 : index
    %c0_13 = arith.constant 0 : index
    %6 = vector.load %arg1[%c0_11, %c0_12, %c0_13] : memref<2x8x16xf32, #tpu.memory_space<vmem>>, vector<1x8x16xf32>
    %7 = vector.shape_cast %6 : vector<1x8x16xf32> to vector<8x16xf32>
    %cst = arith.constant dense<0.000000e+00> : vector<8x128xf32>
    %8 = tpu.matmul %7, %0, %cst {dimension_numbers = #tpu.dot_dimension_numbers<[1], [0], [0], [1], [0, 0, 1, 1], [], []>} : vector<8x16xf32>, vector<16x128xf32>, vector<8x128xf32> -> vector<8x128xf32>
    %9 = vector.broadcast %1 : vector<1x128xf32> to vector<8x128xf32>
    %10 = arith.addf %8, %9 : vector<8x128xf32>
    %c0_14 = arith.constant 0 : index
    %c0_15 = arith.constant 0 : index
    %c0_16 = arith.constant 0 : index
    %11 = vector.load %arg9[%c0_14, %c0_15, %c0_16] : memref<2x8x128xf32, #tpu.memory_space<vmem>>, vector<1x8x128xf32>
    %12 = vector.shape_cast %11 : vector<1x8x128xf32> to vector<8x128xf32>
    %13 = vector.shape_cast %10 : vector<8x128xf32> to vector<1x8x128xf32>
    tpu.vector_store %arg9[%c0_14, %c0_15, %c0_16], %13 {strides = array<i32>} : memref<2x8x128xf32, #tpu.memory_space<vmem>>, vector<1x8x128xf32>,
    %c1 = arith.constant 1 : index
    %c0_17 = arith.constant 0 : index
    %c0_18 = arith.constant 0 : index
    %14 = vector.load %arg1[%c1, %c0_17, %c0_18] : memref<2x8x16xf32, #tpu.memory_space<vmem>>, vector<1x8x16xf32>
    %15 = vector.shape_cast %14 : vector<1x8x16xf32> to vector<8x16xf32>
    %cst_19 = arith.constant dense<0.000000e+00> : vector<8x128xf32>
    %16 = tpu.matmul %15, %0, %cst_19 {dimension_numbers = #tpu.dot_dimension_numbers<[1], [0], [0], [1], [0, 0, 1, 1], [], []>} : vector<8x16xf32>, vector<16x128xf32>, vector<8x128xf32> -> vector<8x128xf32>
    %17 = vector.broadcast %1 : vector<1x128xf32> to vector<8x128xf32>
    %18 = arith.addf %16, %17 : vector<8x128xf32>
    %c1_20 = arith.constant 1 : index
    %c0_21 = arith.constant 0 : index
    %c0_22 = arith.constant 0 : index
    %19 = vector.load %arg9[%c1_20, %c0_21, %c0_22] : memref<2x8x128xf32, #tpu.memory_space<vmem>>, vector<1x8x128xf32>
    %20 = vector.shape_cast %19 : vector<1x8x128xf32> to vector<8x128xf32>
    %21 = vector.shape_cast %18 : vector<8x128xf32> to vector<1x8x128xf32>
    tpu.vector_store %arg9[%c1_20, %c0_21, %c0_22], %21 {strides = array<i32>} : memref<2x8x128xf32, #tpu.memory_space<vmem>>, vector<1x8x128xf32>,
    %cst_23 = arith.constant 0.000000e+00 : f32
    %22 = vector.broadcast %cst_23 : f32 to vector<2x32xf32>
    %cst_24 = arith.constant 0.000000e+00 : f32
    %23 = vector.broadcast %cst_24 : f32 to vector<2x32xf32>
    %cst_25 = arith.constant 1.000000e+00 : f32
    %24 = vector.broadcast %cst_25 : f32 to vector<2x32xf32>
    %cst_26 = arith.constant 1.000000e+00 : f32
    %25 = vector.broadcast %cst_26 : f32 to vector<2x32xf32>
    %c0_27 = arith.constant 0 : index
    %c0_28 = arith.constant 0 : index
    %c0_29 = arith.constant 0 : index
    %26 = vector.load %arg9[%c0_27, %c0_28, %c0_29] : memref<2x8x128xf32, #tpu.memory_space<vmem>>, vector<2x1x128xf32>
    %27 = vector.shape_cast %26 : vector<2x1x128xf32> to vector<2x128xf32>
    %cst_30 = arith.constant dense<0.000000e+00> : vector<2x128xf32>
    %28 = tpu.matmul %22, %3, %cst_30 {dimension_numbers = #tpu.dot_dimension_numbers<[1], [0], [0], [1], [0, 0, 1, 1], [], []>} : vector<2x32xf32>, vector<32x128xf32>, vector<2x128xf32> -> vector<2x128xf32>
    %29 = arith.addf %27, %28 : vector<2x128xf32>
    %30 = arith.negf %29 : vector<2x128xf32>
    %31 = math.exp %30 : vector<2x128xf32>
    %cst_31 = arith.constant 1.000000e+00 : f32
    %32 = vector.broadcast %cst_31 : f32 to vector<2x128xf32>
    %33 = arith.addf %32, %31 : vector<2x128xf32>
    %34 = arith.divf %32, %33 : vector<2x128xf32>
    %35 = math.tanh %29 : vector<2x128xf32>
    %36 = vector.extract_strided_slice %34 {offsets = [0, 0], sizes = [2, 32], strides = [1, 1]} : vector<2x128xf32> to vector<2x32xf32>
    %37 = vector.extract_strided_slice %34 {offsets = [0, 32], sizes = [2, 32], strides = [1, 1]} : vector<2x128xf32> to vector<2x32xf32>
    %38 = vector.extract_strided_slice %35 {offsets = [0, 64], sizes = [2, 32], strides = [1, 1]} : vector<2x128xf32> to vector<2x32xf32>
    %39 = vector.extract_strided_slice %34 {offsets = [0, 96], sizes = [2, 32], strides = [1, 1]} : vector<2x128xf32> to vector<2x32xf32>
    %40 = arith.mulf %37, %24 : vector<2x32xf32>
    %41 = arith.mulf %36, %38 : vector<2x32xf32>
    %42 = arith.addf %40, %41 : vector<2x32xf32>
    %43 = math.tanh %42 : vector<2x32xf32>
    %44 = arith.mulf %39, %43 : vector<2x32xf32>
    %cst_32 = arith.constant dense<0.000000e+00> : vector<2x128xf32>
    %45 = tpu.matmul %44, %5, %cst_32 {dimension_numbers = #tpu.dot_dimension_numbers<[1], [0], [0], [1], [0, 0, 1, 1], [], []>} : vector<2x32xf32>, vector<32x128xf32>, vector<2x128xf32> -> vector<2x128xf32>
    %46 = vector.broadcast %2 : vector<1x128xf32> to vector<2x128xf32>
    %47 = arith.addf %45, %46 : vector<2x128xf32>
    %cst_33 = arith.constant dense<0.000000e+00> : vector<2x128xf32>
    %48 = tpu.matmul %23, %4, %cst_33 {dimension_numbers = #tpu.dot_dimension_numbers<[1], [0], [0], [1], [0, 0, 1, 1], [], []>} : vector<2x32xf32>, vector<32x128xf32>, vector<2x128xf32> -> vector<2x128xf32>
    %49 = arith.addf %47, %48 : vector<2x128xf32>
    %50 = arith.negf %49 : vector<2x128xf32>
    %51 = math.exp %50 : vector<2x128xf32>
    %cst_34 = arith.constant 1.000000e+00 : f32
    %52 = vector.broadcast %cst_34 : f32 to vector<2x128xf32>
    %53 = arith.addf %52, %51 : vector<2x128xf32>
    %54 = arith.divf %52, %53 : vector<2x128xf32>
    %55 = math.tanh %49 : vector<2x128xf32>
    %56 = vector.extract_strided_slice %54 {offsets = [0, 0], sizes = [2, 32], strides = [1, 1]} : vector<2x128xf32> to vector<2x32xf32>
    %57 = vector.extract_strided_slice %54 {offsets = [0, 32], sizes = [2, 32], strides = [1, 1]} : vector<2x128xf32> to vector<2x32xf32>
    %58 = vector.extract_strided_slice %55 {offsets = [0, 64], sizes = [2, 32], strides = [1, 1]} : vector<2x128xf32> to vector<2x32xf32>
    %59 = vector.extract_strided_slice %54 {offsets = [0, 96], sizes = [2, 32], strides = [1, 1]} : vector<2x128xf32> to vector<2x32xf32>
    %60 = arith.mulf %57, %25 : vector<2x32xf32>
    %61 = arith.mulf %56, %58 : vector<2x32xf32>
    %62 = arith.addf %60, %61 : vector<2x32xf32>
    %63 = math.tanh %62 : vector<2x32xf32>
    %64 = arith.mulf %59, %63 : vector<2x32xf32>
    %65 = vector.shape_cast %64 : vector<2x32xf32> to vector<2x1x32xf32>
    %c0_35 = arith.constant 0 : index
    %c0_36 = arith.constant 0 : index
    %c0_37 = arith.constant 0 : index
    %66 = vector.load %arg8[%c0_35, %c0_36, %c0_37] : memref<2x8x32xf32, #tpu.memory_space<vmem>>, vector<2x1x32xf32>
    tpu.vector_store %arg8[%c0_35, %c0_36, %c0_37], %65 {strides = array<i32>} : memref<2x8x32xf32, #tpu.memory_space<vmem>>, vector<2x1x32xf32>,
    %c0_38 = arith.constant 0 : index
    %c1_39 = arith.constant 1 : index
    %c0_40 = arith.constant 0 : index
    %67 = vector.load %arg9[%c0_38, %c1_39, %c0_40] : memref<2x8x128xf32, #tpu.memory_space<vmem>>, vector<2x1x128xf32>
    %68 = vector.shape_cast %67 : vector<2x1x128xf32> to vector<2x128xf32>
    %cst_41 = arith.constant dense<0.000000e+00> : vector<2x128xf32>
    %69 = tpu.matmul %44, %3, %cst_41 {dimension_numbers = #tpu.dot_dimension_numbers<[1], [0], [0], [1], [0, 0, 1, 1], [], []>} : vector<2x32xf32>, vector<32x128xf32>, vector<2x128xf32> -> vector<2x128xf32>
    %70 = arith.addf %68, %69 : vector<2x128xf32>
    %71 = arith.negf %70 : vector<2x128xf32>
    %72 = math.exp %71 : vector<2x128xf32>
    %cst_42 = arith.constant 1.000000e+00 : f32
    %73 = vector.broadcast %cst_42 : f32 to vector<2x128xf32>
    %74 = arith.addf %73, %72 : vector<2x128xf32>
    %75 = arith.divf %73, %74 : vector<2x128xf32>
    %76 = math.tanh %70 : vector<2x128xf32>
    %77 = vector.extract_strided_slice %75 {offsets = [0, 0], sizes = [2, 32], strides = [1, 1]} : vector<2x128xf32> to vector<2x32xf32>
    %78 = vector.extract_strided_slice %75 {offsets = [0, 32], sizes = [2, 32], strides = [1, 1]} : vector<2x128xf32> to vector<2x32xf32>
    %79 = vector.extract_strided_slice %76 {offsets = [0, 64], sizes = [2, 32], strides = [1, 1]} : vector<2x128xf32> to vector<2x32xf32>
    %80 = vector.extract_strided_slice %75 {offsets = [0, 96], sizes = [2, 32], strides = [1, 1]} : vector<2x128xf32> to vector<2x32xf32>
    %81 = arith.mulf %78, %42 : vector<2x32xf32>
    %82 = arith.mulf %77, %79 : vector<2x32xf32>
    %83 = arith.addf %81, %82 : vector<2x32xf32>
    %84 = math.tanh %83 : vector<2x32xf32>
    %85 = arith.mulf %80, %84 : vector<2x32xf32>
    %cst_43 = arith.constant dense<0.000000e+00> : vector<2x128xf32>
    %86 = tpu.matmul %85, %5, %cst_43 {dimension_numbers = #tpu.dot_dimension_numbers<[1], [0], [0], [1], [0, 0, 1, 1], [], []>} : vector<2x32xf32>, vector<32x128xf32>, vector<2x128xf32> -> vector<2x128xf32>
    %87 = vector.broadcast %2 : vector<1x128xf32> to vector<2x128xf32>
    %88 = arith.addf %86, %87 : vector<2x128xf32>
    %cst_44 = arith.constant dense<0.000000e+00> : vector<2x128xf32>
    %89 = tpu.matmul %64, %4, %cst_44 {dimension_numbers = #tpu.dot_dimension_numbers<[1], [0], [0], [1], [0, 0, 1, 1], [], []>} : vector<2x32xf32>, vector<32x128xf32>, vector<2x128xf32> -> vector<2x128xf32>
    %90 = arith.addf %88, %89 : vector<2x128xf32>
    %91 = arith.negf %90 : vector<2x128xf32>
    %92 = math.exp %91 : vector<2x128xf32>
    %cst_45 = arith.constant 1.000000e+00 : f32
    %93 = vector.broadcast %cst_45 : f32 to vector<2x128xf32>
    %94 = arith.addf %93, %92 : vector<2x128xf32>
    %95 = arith.divf %93, %94 : vector<2x128xf32>
    %96 = math.tanh %90 : vector<2x128xf32>
    %97 = vector.extract_strided_slice %95 {offsets = [0, 0], sizes = [2, 32], strides = [1, 1]} : vector<2x128xf32> to vector<2x32xf32>
    %98 = vector.extract_strided_slice %95 {offsets = [0, 32], sizes = [2, 32], strides = [1, 1]} : vector<2x128xf32> to vector<2x32xf32>
    %99 = vector.extract_strided_slice %96 {offsets = [0, 64], sizes = [2, 32], strides = [1, 1]} : vector<2x128xf32> to vector<2x32xf32>
    %100 = vector.extract_strided_slice %95 {offsets = [0, 96], sizes = [2, 32], strides = [1, 1]} : vector<2x128xf32> to vector<2x32xf32>
    %101 = arith.mulf %98, %62 : vector<2x32xf32>
    %102 = arith.mulf %97, %99 : vector<2x32xf32>
    %103 = arith.addf %101, %102 : vector<2x32xf32>
    %104 = math.tanh %103 : vector<2x32xf32>
    %105 = arith.mulf %100, %104 : vector<2x32xf32>
    %106 = vector.shape_cast %105 : vector<2x32xf32> to vector<2x1x32xf32>
    %c0_46 = arith.constant 0 : index
    %c1_47 = arith.constant 1 : index
    %c0_48 = arith.constant 0 : index
    %107 = vector.load %arg8[%c0_46, %c1_47, %c0_48] : memref<2x8x32xf32, #tpu.memory_space<vmem>>, vector<2x1x32xf32>
    tpu.vector_store %arg8[%c0_46, %c1_47, %c0_48], %106 {strides = array<i32>} : memref<2x8x32xf32, #tpu.memory_space<vmem>>, vector<2x1x32xf32>,
    %c0_49 = arith.constant 0 : index
    %c2 = arith.constant 2 : index
    %c0_50 = arith.constant 0 : index
    %108 = vector.load %arg9[%c0_49, %c2, %c0_50] : memref<2x8x128xf32, #tpu.memory_space<vmem>>, vector<2x1x128xf32>
    %109 = vector.shape_cast %108 : vector<2x1x128xf32> to vector<2x128xf32>
    %cst_51 = arith.constant dense<0.000000e+00> : vector<2x128xf32>
    %110 = tpu.matmul %85, %3, %cst_51 {dimension_numbers = #tpu.dot_dimension_numbers<[1], [0], [0], [1], [0, 0, 1, 1], [], []>} : vector<2x32xf32>, vector<32x128xf32>, vector<2x128xf32> -> vector<2x128xf32>
    %111 = arith.addf %109, %110 : vector<2x128xf32>
    %112 = arith.negf %111 : vector<2x128xf32>
    %113 = math.exp %112 : vector<2x128xf32>
    %cst_52 = arith.constant 1.000000e+00 : f32
    %114 = vector.broadcast %cst_52 : f32 to vector<2x128xf32>
    %115 = arith.addf %114, %113 : vector<2x128xf32>
    %116 = arith.divf %114, %115 : vector<2x128xf32>
    %117 = math.tanh %111 : vector<2x128xf32>
    %118 = vector.extract_strided_slice %116 {offsets = [0, 0], sizes = [2, 32], strides = [1, 1]} : vector<2x128xf32> to vector<2x32xf32>
    %119 = vector.extract_strided_slice %116 {offsets = [0, 32], sizes = [2, 32], strides = [1, 1]} : vector<2x128xf32> to vector<2x32xf32>
    %120 = vector.extract_strided_slice %117 {offsets = [0, 64], sizes = [2, 32], strides = [1, 1]} : vector<2x128xf32> to vector<2x32xf32>
    %121 = vector.extract_strided_slice %116 {offsets = [0, 96], sizes = [2, 32], strides = [1, 1]} : vector<2x128xf32> to vector<2x32xf32>
    %122 = arith.mulf %119, %83 : vector<2x32xf32>
    %123 = arith.mulf %118, %120 : vector<2x32xf32>
    %124 = arith.addf %122, %123 : vector<2x32xf32>
    %125 = math.tanh %124 : vector<2x32xf32>
    %126 = arith.mulf %121, %125 : vector<2x32xf32>
    %cst_53 = arith.constant dense<0.000000e+00> : vector<2x128xf32>
    %127 = tpu.matmul %126, %5, %cst_53 {dimension_numbers = #tpu.dot_dimension_numbers<[1], [0], [0], [1], [0, 0, 1, 1], [], []>} : vector<2x32xf32>, vector<32x128xf32>, vector<2x128xf32> -> vector<2x128xf32>
    %128 = vector.broadcast %2 : vector<1x128xf32> to vector<2x128xf32>
    %129 = arith.addf %127, %128 : vector<2x128xf32>
    %cst_54 = arith.constant dense<0.000000e+00> : vector<2x128xf32>
    %130 = tpu.matmul %105, %4, %cst_54 {dimension_numbers = #tpu.dot_dimension_numbers<[1], [0], [0], [1], [0, 0, 1, 1], [], []>} : vector<2x32xf32>, vector<32x128xf32>, vector<2x128xf32> -> vector<2x128xf32>
    %131 = arith.addf %129, %130 : vector<2x128xf32>
    %132 = arith.negf %131 : vector<2x128xf32>
    %133 = math.exp %132 : vector<2x128xf32>
    %cst_55 = arith.constant 1.000000e+00 : f32
    %134 = vector.broadcast %cst_55 : f32 to vector<2x128xf32>
    %135 = arith.addf %134, %133 : vector<2x128xf32>
    %136 = arith.divf %134, %135 : vector<2x128xf32>
    %137 = math.tanh %131 : vector<2x128xf32>
    %138 = vector.extract_strided_slice %136 {offsets = [0, 0], sizes = [2, 32], strides = [1, 1]} : vector<2x128xf32> to vector<2x32xf32>
    %139 = vector.extract_strided_slice %136 {offsets = [0, 32], sizes = [2, 32], strides = [1, 1]} : vector<2x128xf32> to vector<2x32xf32>
    %140 = vector.extract_strided_slice %137 {offsets = [0, 64], sizes = [2, 32], strides = [1, 1]} : vector<2x128xf32> to vector<2x32xf32>
    %141 = vector.extract_strided_slice %136 {offsets = [0, 96], sizes = [2, 32], strides = [1, 1]} : vector<2x128xf32> to vector<2x32xf32>
    %142 = arith.mulf %139, %103 : vector<2x32xf32>
    %143 = arith.mulf %138, %140 : vector<2x32xf32>
    %144 = arith.addf %142, %143 : vector<2x32xf32>
    %145 = math.tanh %144 : vector<2x32xf32>
    %146 = arith.mulf %141, %145 : vector<2x32xf32>
    %147 = vector.shape_cast %146 : vector<2x32xf32> to vector<2x1x32xf32>
    %c0_56 = arith.constant 0 : index
    %c2_57 = arith.constant 2 : index
    %c0_58 = arith.constant 0 : index
    %148 = vector.load %arg8[%c0_56, %c2_57, %c0_58] : memref<2x8x32xf32, #tpu.memory_space<vmem>>, vector<2x1x32xf32>
    tpu.vector_store %arg8[%c0_56, %c2_57, %c0_58], %147 {strides = array<i32>} : memref<2x8x32xf32, #tpu.memory_space<vmem>>, vector<2x1x32xf32>,
    %c0_59 = arith.constant 0 : index
    %c3 = arith.constant 3 : index
    %c0_60 = arith.constant 0 : index
    %149 = vector.load %arg9[%c0_59, %c3, %c0_60] : memref<2x8x128xf32, #tpu.memory_space<vmem>>, vector<2x1x128xf32>
    %150 = vector.shape_cast %149 : vector<2x1x128xf32> to vector<2x128xf32>
    %cst_61 = arith.constant dense<0.000000e+00> : vector<2x128xf32>
    %151 = tpu.matmul %126, %3, %cst_61 {dimension_numbers = #tpu.dot_dimension_numbers<[1], [0], [0], [1], [0, 0, 1, 1], [], []>} : vector<2x32xf32>, vector<32x128xf32>, vector<2x128xf32> -> vector<2x128xf32>
    %152 = arith.addf %150, %151 : vector<2x128xf32>
    %153 = arith.negf %152 : vector<2x128xf32>
    %154 = math.exp %153 : vector<2x128xf32>
    %cst_62 = arith.constant 1.000000e+00 : f32
    %155 = vector.broadcast %cst_62 : f32 to vector<2x128xf32>
    %156 = arith.addf %155, %154 : vector<2x128xf32>
    %157 = arith.divf %155, %156 : vector<2x128xf32>
    %158 = math.tanh %152 : vector<2x128xf32>
    %159 = vector.extract_strided_slice %157 {offsets = [0, 0], sizes = [2, 32], strides = [1, 1]} : vector<2x128xf32> to vector<2x32xf32>
    %160 = vector.extract_strided_slice %157 {offsets = [0, 32], sizes = [2, 32], strides = [1, 1]} : vector<2x128xf32> to vector<2x32xf32>
    %161 = vector.extract_strided_slice %158 {offsets = [0, 64], sizes = [2, 32], strides = [1, 1]} : vector<2x128xf32> to vector<2x32xf32>
    %162 = vector.extract_strided_slice %157 {offsets = [0, 96], sizes = [2, 32], strides = [1, 1]} : vector<2x128xf32> to vector<2x32xf32>
    %163 = arith.mulf %160, %124 : vector<2x32xf32>
    %164 = arith.mulf %159, %161 : vector<2x32xf32>
    %165 = arith.addf %163, %164 : vector<2x32xf32>
    %166 = math.tanh %165 : vector<2x32xf32>
    %167 = arith.mulf %162, %166 : vector<2x32xf32>
    %cst_63 = arith.constant dense<0.000000e+00> : vector<2x128xf32>
    %168 = tpu.matmul %167, %5, %cst_63 {dimension_numbers = #tpu.dot_dimension_numbers<[1], [0], [0], [1], [0, 0, 1, 1], [], []>} : vector<2x32xf32>, vector<32x128xf32>, vector<2x128xf32> -> vector<2x128xf32>
    %169 = vector.broadcast %2 : vector<1x128xf32> to vector<2x128xf32>
    %170 = arith.addf %168, %169 : vector<2x128xf32>
    %cst_64 = arith.constant dense<0.000000e+00> : vector<2x128xf32>
    %171 = tpu.matmul %146, %4, %cst_64 {dimension_numbers = #tpu.dot_dimension_numbers<[1], [0], [0], [1], [0, 0, 1, 1], [], []>} : vector<2x32xf32>, vector<32x128xf32>, vector<2x128xf32> -> vector<2x128xf32>
    %172 = arith.addf %170, %171 : vector<2x128xf32>
    %173 = arith.negf %172 : vector<2x128xf32>
    %174 = math.exp %173 : vector<2x128xf32>
    %cst_65 = arith.constant 1.000000e+00 : f32
    %175 = vector.broadcast %cst_65 : f32 to vector<2x128xf32>
    %176 = arith.addf %175, %174 : vector<2x128xf32>
    %177 = arith.divf %175, %176 : vector<2x128xf32>
    %178 = math.tanh %172 : vector<2x128xf32>
    %179 = vector.extract_strided_slice %177 {offsets = [0, 0], sizes = [2, 32], strides = [1, 1]} : vector<2x128xf32> to vector<2x32xf32>
    %180 = vector.extract_strided_slice %177 {offsets = [0, 32], sizes = [2, 32], strides = [1, 1]} : vector<2x128xf32> to vector<2x32xf32>
    %181 = vector.extract_strided_slice %178 {offsets = [0, 64], sizes = [2, 32], strides = [1, 1]} : vector<2x128xf32> to vector<2x32xf32>
    %182 = vector.extract_strided_slice %177 {offsets = [0, 96], sizes = [2, 32], strides = [1, 1]} : vector<2x128xf32> to vector<2x32xf32>
    %183 = arith.mulf %180, %144 : vector<2x32xf32>
    %184 = arith.mulf %179, %181 : vector<2x32xf32>
    %185 = arith.addf %183, %184 : vector<2x32xf32>
    %186 = math.tanh %185 : vector<2x32xf32>
    %187 = arith.mulf %182, %186 : vector<2x32xf32>
    %188 = vector.shape_cast %187 : vector<2x32xf32> to vector<2x1x32xf32>
    %c0_66 = arith.constant 0 : index
    %c3_67 = arith.constant 3 : index
    %c0_68 = arith.constant 0 : index
    %189 = vector.load %arg8[%c0_66, %c3_67, %c0_68] : memref<2x8x32xf32, #tpu.memory_space<vmem>>, vector<2x1x32xf32>
    tpu.vector_store %arg8[%c0_66, %c3_67, %c0_68], %188 {strides = array<i32>} : memref<2x8x32xf32, #tpu.memory_space<vmem>>, vector<2x1x32xf32>,
    %c0_69 = arith.constant 0 : index
    %c4 = arith.constant 4 : index
    %c0_70 = arith.constant 0 : index
    %190 = vector.load %arg9[%c0_69, %c4, %c0_70] : memref<2x8x128xf32, #tpu.memory_space<vmem>>, vector<2x1x128xf32>
    %191 = vector.shape_cast %190 : vector<2x1x128xf32> to vector<2x128xf32>
    %cst_71 = arith.constant dense<0.000000e+00> : vector<2x128xf32>
    %192 = tpu.matmul %167, %3, %cst_71 {dimension_numbers = #tpu.dot_dimension_numbers<[1], [0], [0], [1], [0, 0, 1, 1], [], []>} : vector<2x32xf32>, vector<32x128xf32>, vector<2x128xf32> -> vector<2x128xf32>
    %193 = arith.addf %191, %192 : vector<2x128xf32>
    %194 = arith.negf %193 : vector<2x128xf32>
    %195 = math.exp %194 : vector<2x128xf32>
    %cst_72 = arith.constant 1.000000e+00 : f32
    %196 = vector.broadcast %cst_72 : f32 to vector<2x128xf32>
    %197 = arith.addf %196, %195 : vector<2x128xf32>
    %198 = arith.divf %196, %197 : vector<2x128xf32>
    %199 = math.tanh %193 : vector<2x128xf32>
    %200 = vector.extract_strided_slice %198 {offsets = [0, 0], sizes = [2, 32], strides = [1, 1]} : vector<2x128xf32> to vector<2x32xf32>
    %201 = vector.extract_strided_slice %198 {offsets = [0, 32], sizes = [2, 32], strides = [1, 1]} : vector<2x128xf32> to vector<2x32xf32>
    %202 = vector.extract_strided_slice %199 {offsets = [0, 64], sizes = [2, 32], strides = [1, 1]} : vector<2x128xf32> to vector<2x32xf32>
    %203 = vector.extract_strided_slice %198 {offsets = [0, 96], sizes = [2, 32], strides = [1, 1]} : vector<2x128xf32> to vector<2x32xf32>
    %204 = arith.mulf %201, %165 : vector<2x32xf32>
    %205 = arith.mulf %200, %202 : vector<2x32xf32>
    %206 = arith.addf %204, %205 : vector<2x32xf32>
    %207 = math.tanh %206 : vector<2x32xf32>
    %208 = arith.mulf %203, %207 : vector<2x32xf32>
    %cst_73 = arith.constant dense<0.000000e+00> : vector<2x128xf32>
    %209 = tpu.matmul %208, %5, %cst_73 {dimension_numbers = #tpu.dot_dimension_numbers<[1], [0], [0], [1], [0, 0, 1, 1], [], []>} : vector<2x32xf32>, vector<32x128xf32>, vector<2x128xf32> -> vector<2x128xf32>
    %210 = vector.broadcast %2 : vector<1x128xf32> to vector<2x128xf32>
    %211 = arith.addf %209, %210 : vector<2x128xf32>
    %cst_74 = arith.constant dense<0.000000e+00> : vector<2x128xf32>
    %212 = tpu.matmul %187, %4, %cst_74 {dimension_numbers = #tpu.dot_dimension_numbers<[1], [0], [0], [1], [0, 0, 1, 1], [], []>} : vector<2x32xf32>, vector<32x128xf32>, vector<2x128xf32> -> vector<2x128xf32>
    %213 = arith.addf %211, %212 : vector<2x128xf32>
    %214 = arith.negf %213 : vector<2x128xf32>
    %215 = math.exp %214 : vector<2x128xf32>
    %cst_75 = arith.constant 1.000000e+00 : f32
    %216 = vector.broadcast %cst_75 : f32 to vector<2x128xf32>
    %217 = arith.addf %216, %215 : vector<2x128xf32>
    %218 = arith.divf %216, %217 : vector<2x128xf32>
    %219 = math.tanh %213 : vector<2x128xf32>
    %220 = vector.extract_strided_slice %218 {offsets = [0, 0], sizes = [2, 32], strides = [1, 1]} : vector<2x128xf32> to vector<2x32xf32>
    %221 = vector.extract_strided_slice %218 {offsets = [0, 32], sizes = [2, 32], strides = [1, 1]} : vector<2x128xf32> to vector<2x32xf32>
    %222 = vector.extract_strided_slice %219 {offsets = [0, 64], sizes = [2, 32], strides = [1, 1]} : vector<2x128xf32> to vector<2x32xf32>
    %223 = vector.extract_strided_slice %218 {offsets = [0, 96], sizes = [2, 32], strides = [1, 1]} : vector<2x128xf32> to vector<2x32xf32>
    %224 = arith.mulf %221, %185 : vector<2x32xf32>
    %225 = arith.mulf %220, %222 : vector<2x32xf32>
    %226 = arith.addf %224, %225 : vector<2x32xf32>
    %227 = math.tanh %226 : vector<2x32xf32>
    %228 = arith.mulf %223, %227 : vector<2x32xf32>
    %229 = vector.shape_cast %228 : vector<2x32xf32> to vector<2x1x32xf32>
    %c0_76 = arith.constant 0 : index
    %c4_77 = arith.constant 4 : index
    %c0_78 = arith.constant 0 : index
    %230 = vector.load %arg8[%c0_76, %c4_77, %c0_78] : memref<2x8x32xf32, #tpu.memory_space<vmem>>, vector<2x1x32xf32>
    tpu.vector_store %arg8[%c0_76, %c4_77, %c0_78], %229 {strides = array<i32>} : memref<2x8x32xf32, #tpu.memory_space<vmem>>, vector<2x1x32xf32>,
    %c0_79 = arith.constant 0 : index
    %c5 = arith.constant 5 : index
    %c0_80 = arith.constant 0 : index
    %231 = vector.load %arg9[%c0_79, %c5, %c0_80] : memref<2x8x128xf32, #tpu.memory_space<vmem>>, vector<2x1x128xf32>
    %232 = vector.shape_cast %231 : vector<2x1x128xf32> to vector<2x128xf32>
    %cst_81 = arith.constant dense<0.000000e+00> : vector<2x128xf32>
    %233 = tpu.matmul %208, %3, %cst_81 {dimension_numbers = #tpu.dot_dimension_numbers<[1], [0], [0], [1], [0, 0, 1, 1], [], []>} : vector<2x32xf32>, vector<32x128xf32>, vector<2x128xf32> -> vector<2x128xf32>
    %234 = arith.addf %232, %233 : vector<2x128xf32>
    %235 = arith.negf %234 : vector<2x128xf32>
    %236 = math.exp %235 : vector<2x128xf32>
    %cst_82 = arith.constant 1.000000e+00 : f32
    %237 = vector.broadcast %cst_82 : f32 to vector<2x128xf32>
    %238 = arith.addf %237, %236 : vector<2x128xf32>
    %239 = arith.divf %237, %238 : vector<2x128xf32>
    %240 = math.tanh %234 : vector<2x128xf32>
    %241 = vector.extract_strided_slice %239 {offsets = [0, 0], sizes = [2, 32], strides = [1, 1]} : vector<2x128xf32> to vector<2x32xf32>
    %242 = vector.extract_strided_slice %239 {offsets = [0, 32], sizes = [2, 32], strides = [1, 1]} : vector<2x128xf32> to vector<2x32xf32>
    %243 = vector.extract_strided_slice %240 {offsets = [0, 64], sizes = [2, 32], strides = [1, 1]} : vector<2x128xf32> to vector<2x32xf32>
    %244 = vector.extract_strided_slice %239 {offsets = [0, 96], sizes = [2, 32], strides = [1, 1]} : vector<2x128xf32> to vector<2x32xf32>
    %245 = arith.mulf %242, %206 : vector<2x32xf32>
    %246 = arith.mulf %241, %243 : vector<2x32xf32>
    %247 = arith.addf %245, %246 : vector<2x32xf32>
    %248 = math.tanh %247 : vector<2x32xf32>
    %249 = arith.mulf %244, %248 : vector<2x32xf32>
    %cst_83 = arith.constant dense<0.000000e+00> : vector<2x128xf32>
    %250 = tpu.matmul %249, %5, %cst_83 {dimension_numbers = #tpu.dot_dimension_numbers<[1], [0], [0], [1], [0, 0, 1, 1], [], []>} : vector<2x32xf32>, vector<32x128xf32>, vector<2x128xf32> -> vector<2x128xf32>
    %251 = vector.broadcast %2 : vector<1x128xf32> to vector<2x128xf32>
    %252 = arith.addf %250, %251 : vector<2x128xf32>
    %cst_84 = arith.constant dense<0.000000e+00> : vector<2x128xf32>
    %253 = tpu.matmul %228, %4, %cst_84 {dimension_numbers = #tpu.dot_dimension_numbers<[1], [0], [0], [1], [0, 0, 1, 1], [], []>} : vector<2x32xf32>, vector<32x128xf32>, vector<2x128xf32> -> vector<2x128xf32>
    %254 = arith.addf %252, %253 : vector<2x128xf32>
    %255 = arith.negf %254 : vector<2x128xf32>
    %256 = math.exp %255 : vector<2x128xf32>
    %cst_85 = arith.constant 1.000000e+00 : f32
    %257 = vector.broadcast %cst_85 : f32 to vector<2x128xf32>
    %258 = arith.addf %257, %256 : vector<2x128xf32>
    %259 = arith.divf %257, %258 : vector<2x128xf32>
    %260 = math.tanh %254 : vector<2x128xf32>
    %261 = vector.extract_strided_slice %259 {offsets = [0, 0], sizes = [2, 32], strides = [1, 1]} : vector<2x128xf32> to vector<2x32xf32>
    %262 = vector.extract_strided_slice %259 {offsets = [0, 32], sizes = [2, 32], strides = [1, 1]} : vector<2x128xf32> to vector<2x32xf32>
    %263 = vector.extract_strided_slice %260 {offsets = [0, 64], sizes = [2, 32], strides = [1, 1]} : vector<2x128xf32> to vector<2x32xf32>
    %264 = vector.extract_strided_slice %259 {offsets = [0, 96], sizes = [2, 32], strides = [1, 1]} : vector<2x128xf32> to vector<2x32xf32>
    %265 = arith.mulf %262, %226 : vector<2x32xf32>
    %266 = arith.mulf %261, %263 : vector<2x32xf32>
    %267 = arith.addf %265, %266 : vector<2x32xf32>
    %268 = math.tanh %267 : vector<2x32xf32>
    %269 = arith.mulf %264, %268 : vector<2x32xf32>
    %270 = vector.shape_cast %269 : vector<2x32xf32> to vector<2x1x32xf32>
    %c0_86 = arith.constant 0 : index
    %c5_87 = arith.constant 5 : index
    %c0_88 = arith.constant 0 : index
    %271 = vector.load %arg8[%c0_86, %c5_87, %c0_88] : memref<2x8x32xf32, #tpu.memory_space<vmem>>, vector<2x1x32xf32>
    tpu.vector_store %arg8[%c0_86, %c5_87, %c0_88], %270 {strides = array<i32>} : memref<2x8x32xf32, #tpu.memory_space<vmem>>, vector<2x1x32xf32>,
    %c0_89 = arith.constant 0 : index
    %c6 = arith.constant 6 : index
    %c0_90 = arith.constant 0 : index
    %272 = vector.load %arg9[%c0_89, %c6, %c0_90] : memref<2x8x128xf32, #tpu.memory_space<vmem>>, vector<2x1x128xf32>
    %273 = vector.shape_cast %272 : vector<2x1x128xf32> to vector<2x128xf32>
    %cst_91 = arith.constant dense<0.000000e+00> : vector<2x128xf32>
    %274 = tpu.matmul %249, %3, %cst_91 {dimension_numbers = #tpu.dot_dimension_numbers<[1], [0], [0], [1], [0, 0, 1, 1], [], []>} : vector<2x32xf32>, vector<32x128xf32>, vector<2x128xf32> -> vector<2x128xf32>
    %275 = arith.addf %273, %274 : vector<2x128xf32>
    %276 = arith.negf %275 : vector<2x128xf32>
    %277 = math.exp %276 : vector<2x128xf32>
    %cst_92 = arith.constant 1.000000e+00 : f32
    %278 = vector.broadcast %cst_92 : f32 to vector<2x128xf32>
    %279 = arith.addf %278, %277 : vector<2x128xf32>
    %280 = arith.divf %278, %279 : vector<2x128xf32>
    %281 = math.tanh %275 : vector<2x128xf32>
    %282 = vector.extract_strided_slice %280 {offsets = [0, 0], sizes = [2, 32], strides = [1, 1]} : vector<2x128xf32> to vector<2x32xf32>
    %283 = vector.extract_strided_slice %280 {offsets = [0, 32], sizes = [2, 32], strides = [1, 1]} : vector<2x128xf32> to vector<2x32xf32>
    %284 = vector.extract_strided_slice %281 {offsets = [0, 64], sizes = [2, 32], strides = [1, 1]} : vector<2x128xf32> to vector<2x32xf32>
    %285 = vector.extract_strided_slice %280 {offsets = [0, 96], sizes = [2, 32], strides = [1, 1]} : vector<2x128xf32> to vector<2x32xf32>
    %286 = arith.mulf %283, %247 : vector<2x32xf32>
    %287 = arith.mulf %282, %284 : vector<2x32xf32>
    %288 = arith.addf %286, %287 : vector<2x32xf32>
    %289 = math.tanh %288 : vector<2x32xf32>
    %290 = arith.mulf %285, %289 : vector<2x32xf32>
    %cst_93 = arith.constant dense<0.000000e+00> : vector<2x128xf32>
    %291 = tpu.matmul %290, %5, %cst_93 {dimension_numbers = #tpu.dot_dimension_numbers<[1], [0], [0], [1], [0, 0, 1, 1], [], []>} : vector<2x32xf32>, vector<32x128xf32>, vector<2x128xf32> -> vector<2x128xf32>
    %292 = vector.broadcast %2 : vector<1x128xf32> to vector<2x128xf32>
    %293 = arith.addf %291, %292 : vector<2x128xf32>
    %cst_94 = arith.constant dense<0.000000e+00> : vector<2x128xf32>
    %294 = tpu.matmul %269, %4, %cst_94 {dimension_numbers = #tpu.dot_dimension_numbers<[1], [0], [0], [1], [0, 0, 1, 1], [], []>} : vector<2x32xf32>, vector<32x128xf32>, vector<2x128xf32> -> vector<2x128xf32>
    %295 = arith.addf %293, %294 : vector<2x128xf32>
    %296 = arith.negf %295 : vector<2x128xf32>
    %297 = math.exp %296 : vector<2x128xf32>
    %cst_95 = arith.constant 1.000000e+00 : f32
    %298 = vector.broadcast %cst_95 : f32 to vector<2x128xf32>
    %299 = arith.addf %298, %297 : vector<2x128xf32>
    %300 = arith.divf %298, %299 : vector<2x128xf32>
    %301 = math.tanh %295 : vector<2x128xf32>
    %302 = vector.extract_strided_slice %300 {offsets = [0, 0], sizes = [2, 32], strides = [1, 1]} : vector<2x128xf32> to vector<2x32xf32>
    %303 = vector.extract_strided_slice %300 {offsets = [0, 32], sizes = [2, 32], strides = [1, 1]} : vector<2x128xf32> to vector<2x32xf32>
    %304 = vector.extract_strided_slice %301 {offsets = [0, 64], sizes = [2, 32], strides = [1, 1]} : vector<2x128xf32> to vector<2x32xf32>
    %305 = vector.extract_strided_slice %300 {offsets = [0, 96], sizes = [2, 32], strides = [1, 1]} : vector<2x128xf32> to vector<2x32xf32>
    %306 = arith.mulf %303, %267 : vector<2x32xf32>
    %307 = arith.mulf %302, %304 : vector<2x32xf32>
    %308 = arith.addf %306, %307 : vector<2x32xf32>
    %309 = math.tanh %308 : vector<2x32xf32>
    %310 = arith.mulf %305, %309 : vector<2x32xf32>
    %311 = vector.shape_cast %310 : vector<2x32xf32> to vector<2x1x32xf32>
    %c0_96 = arith.constant 0 : index
    %c6_97 = arith.constant 6 : index
    %c0_98 = arith.constant 0 : index
    %312 = vector.load %arg8[%c0_96, %c6_97, %c0_98] : memref<2x8x32xf32, #tpu.memory_space<vmem>>, vector<2x1x32xf32>
    tpu.vector_store %arg8[%c0_96, %c6_97, %c0_98], %311 {strides = array<i32>} : memref<2x8x32xf32, #tpu.memory_space<vmem>>, vector<2x1x32xf32>,
    %c0_99 = arith.constant 0 : index
    %c7 = arith.constant 7 : index
    %c0_100 = arith.constant 0 : index
    %313 = vector.load %arg9[%c0_99, %c7, %c0_100] : memref<2x8x128xf32, #tpu.memory_space<vmem>>, vector<2x1x128xf32>
    %314 = vector.shape_cast %313 : vector<2x1x128xf32> to vector<2x128xf32>
    %cst_101 = arith.constant dense<0.000000e+00> : vector<2x128xf32>
    %315 = tpu.matmul %290, %3, %cst_101 {dimension_numbers = #tpu.dot_dimension_numbers<[1], [0], [0], [1], [0, 0, 1, 1], [], []>} : vector<2x32xf32>, vector<32x128xf32>, vector<2x128xf32> -> vector<2x128xf32>
    %316 = arith.addf %314, %315 : vector<2x128xf32>
    %317 = arith.negf %316 : vector<2x128xf32>
    %318 = math.exp %317 : vector<2x128xf32>
    %cst_102 = arith.constant 1.000000e+00 : f32
    %319 = vector.broadcast %cst_102 : f32 to vector<2x128xf32>
    %320 = arith.addf %319, %318 : vector<2x128xf32>
    %321 = arith.divf %319, %320 : vector<2x128xf32>
    %322 = math.tanh %316 : vector<2x128xf32>
    %323 = vector.extract_strided_slice %321 {offsets = [0, 0], sizes = [2, 32], strides = [1, 1]} : vector<2x128xf32> to vector<2x32xf32>
    %324 = vector.extract_strided_slice %321 {offsets = [0, 32], sizes = [2, 32], strides = [1, 1]} : vector<2x128xf32> to vector<2x32xf32>
    %325 = vector.extract_strided_slice %322 {offsets = [0, 64], sizes = [2, 32], strides = [1, 1]} : vector<2x128xf32> to vector<2x32xf32>
    %326 = vector.extract_strided_slice %321 {offsets = [0, 96], sizes = [2, 32], strides = [1, 1]} : vector<2x128xf32> to vector<2x32xf32>
    %327 = arith.mulf %324, %288 : vector<2x32xf32>
    %328 = arith.mulf %323, %325 : vector<2x32xf32>
    %329 = arith.addf %327, %328 : vector<2x32xf32>
    %330 = math.tanh %329 : vector<2x32xf32>
    %331 = arith.mulf %326, %330 : vector<2x32xf32>
    %cst_103 = arith.constant dense<0.000000e+00> : vector<2x128xf32>
    %332 = tpu.matmul %331, %5, %cst_103 {dimension_numbers = #tpu.dot_dimension_numbers<[1], [0], [0], [1], [0, 0, 1, 1], [], []>} : vector<2x32xf32>, vector<32x128xf32>, vector<2x128xf32> -> vector<2x128xf32>
    %333 = vector.broadcast %2 : vector<1x128xf32> to vector<2x128xf32>
    %334 = arith.addf %332, %333 : vector<2x128xf32>
    %cst_104 = arith.constant dense<0.000000e+00> : vector<2x128xf32>
    %335 = tpu.matmul %310, %4, %cst_104 {dimension_numbers = #tpu.dot_dimension_numbers<[1], [0], [0], [1], [0, 0, 1, 1], [], []>} : vector<2x32xf32>, vector<32x128xf32>, vector<2x128xf32> -> vector<2x128xf32>
    %336 = arith.addf %334, %335 : vector<2x128xf32>
    %337 = arith.negf %336 : vector<2x128xf32>
    %338 = math.exp %337 : vector<2x128xf32>
    %cst_105 = arith.constant 1.000000e+00 : f32
    %339 = vector.broadcast %cst_105 : f32 to vector<2x128xf32>
    %340 = arith.addf %339, %338 : vector<2x128xf32>
    %341 = arith.divf %339, %340 : vector<2x128xf32>
    %342 = math.tanh %336 : vector<2x128xf32>
    %343 = vector.extract_strided_slice %341 {offsets = [0, 0], sizes = [2, 32], strides = [1, 1]} : vector<2x128xf32> to vector<2x32xf32>
    %344 = vector.extract_strided_slice %341 {offsets = [0, 32], sizes = [2, 32], strides = [1, 1]} : vector<2x128xf32> to vector<2x32xf32>
    %345 = vector.extract_strided_slice %342 {offsets = [0, 64], sizes = [2, 32], strides = [1, 1]} : vector<2x128xf32> to vector<2x32xf32>
    %346 = vector.extract_strided_slice %341 {offsets = [0, 96], sizes = [2, 32], strides = [1, 1]} : vector<2x128xf32> to vector<2x32xf32>
    %347 = arith.mulf %344, %308 : vector<2x32xf32>
    %348 = arith.mulf %343, %345 : vector<2x32xf32>
    %349 = arith.addf %347, %348 : vector<2x32xf32>
    %350 = math.tanh %349 : vector<2x32xf32>
    %351 = arith.mulf %346, %350 : vector<2x32xf32>
    %352 = vector.shape_cast %351 : vector<2x32xf32> to vector<2x1x32xf32>
    %c0_106 = arith.constant 0 : index
    %c7_107 = arith.constant 7 : index
    %c0_108 = arith.constant 0 : index
    %353 = vector.load %arg8[%c0_106, %c7_107, %c0_108] : memref<2x8x32xf32, #tpu.memory_space<vmem>>, vector<2x1x32xf32>
    tpu.vector_store %arg8[%c0_106, %c7_107, %c0_108], %352 {strides = array<i32>} : memref<2x8x32xf32, #tpu.memory_space<vmem>>, vector<2x1x32xf32>,
    return
  }
  func.func @transform_0(%arg0: i32) -> (i32, i32, i32) {
    %c0_i32 = arith.constant 0 : i32
    %c0_i32_0 = arith.constant 0 : i32
    %c0_i32_1 = arith.constant 0 : i32
    %c0_i32_2 = arith.constant 0 : i32
    return %c0_i32, %c0_i32_0, %c0_i32_1 : i32, i32, i32
  }
  func.func @transform_1(%arg0: i32) -> (i32, i32) {
    %c0_i32 = arith.constant 0 : i32
    %c0_i32_0 = arith.constant 0 : i32
    %c0_i32_1 = arith.constant 0 : i32
    return %c0_i32, %c0_i32_0 : i32, i32
  }
  func.func @transform_2(%arg0: i32) -> (i32, i32) {
    %c0_i32 = arith.constant 0 : i32
    %c0_i32_0 = arith.constant 0 : i32
    %c0_i32_1 = arith.constant 0 : i32
    return %c0_i32, %c0_i32_0 : i32, i32
  }
  func.func @transform_3(%arg0: i32) -> (i32, i32) {
    %c0_i32 = arith.constant 0 : i32
    %c0_i32_0 = arith.constant 0 : i32
    %c0_i32_1 = arith.constant 0 : i32
    return %c0_i32, %c0_i32_0 : i32, i32
  }
  func.func @transform_4(%arg0: i32) -> (i32, i32) {
    %c0_i32 = arith.constant 0 : i32
    %c0_i32_0 = arith.constant 0 : i32
    %c0_i32_1 = arith.constant 0 : i32
    return %c0_i32, %c0_i32_0 : i32, i32
  }
  func.func @transform_5(%arg0: i32) -> (i32, i32) {
    %c0_i32 = arith.constant 0 : i32
    %c0_i32_0 = arith.constant 0 : i32
    %c0_i32_1 = arith.constant 0 : i32
    return %c0_i32, %c0_i32_0 : i32, i32
  }
  func.func @transform_6(%arg0: i32) -> (i32, i32) {
    %c0_i32 = arith.constant 0 : i32
    %c0_i32_0 = arith.constant 0 : i32
    %c0_i32_1 = arith.constant 0 : i32
    return %c0_i32, %c0_i32_0 : i32, i32
  }
  func.func @transform_7(%arg0: i32) -> (i32, i32, i32) {
    %c0_i32 = arith.constant 0 : i32
    %c0_i32_0 = arith.constant 0 : i32
    %c0_i32_1 = arith.constant 0 : i32
    %c0_i32_2 = arith.constant 0 : i32
    return %c0_i32, %c0_i32_0, %c0_i32_1 : i32, i32, i32
  }
}

</mosaic_0001>

<bundles_post_ra>
// kernel: model_lstm_forward.1
= control target key start
LH: loop header
LB: loop body
LE: loop exit
PB: predicated region body
PF: predicated region fallthrough
CT: control target
= control target key end

     0   :  { %12 = vsyncpa [#allocation4], 0  ;;  %s4614_s0 = inlined_call_operand.hbm [shape: f32[2,8,16], index: 0, kind: input, shape index: {}]   ;;  %s4615_s1 = inlined_call_operand.hbm [shape: f32[16,128], index: 1, kind: input, shape index: {}]   ;;  %s4616_s2 = inlined_call_operand.hbm [shape: f32[32,128], index: 2, kind: input, shape index: {}]   ;;  %s4617_s3 = inlined_call_operand.vmem [shape: f32[1,128], index: 3, kind: input, shape index: {}]   ;;  %s4618_s4 = inlined_call_operand.vmem [shape: f32[32,128], index: 4, kind: input, shape index: {}]   ;;  %s4619_s5 = inlined_call_operand.hbm [shape: f32[32,128], index: 5, kind: input, shape index: {}]   ;;  %s4620_s6 = inlined_call_operand.vmem [shape: f32[1,128], index: 6, kind: input, shape index: {}]   ;;  %s4621_s7 = inlined_call_operand.hbm [shape: f32[2,8,32], index: 7, kind: output, shape index: {}]  }
   0x1   :  { %13 = vsyncpa [#allocation7], 0 }
   0x2   :  { %14 = vsyncpa [#allocation10], 0 }
   0x3   :  { %15 = vsyncpa [#allocation5], 0  ;;  %s3969_s24 = smov [#allocation6]   ;;  %s3970_s26 = smov [#allocation3]  }
   0x4   :  { %s33_s25 = sshll.u32 %s3969_s24, 4  ;;  %s21_s27 = sshll.u32 %s3970_s26, 4  ;;  %s34_s25 = int_to_ptr.vmem [resolvable:$true] %s33_s25  ;;  %s4022_s27 = int_to_ptr.vmem [resolvable:$true] %s21_s27 }
   0x5   :  { %s3851_s30 = scalar_lea.hbm %s4615_s1, 256 }
   0x6   :  { %p3852_p0 = scmp.ne.s32.totalorder %s4615_s1, %s3851_s30  ;;  %p3855_p1 = scmp.lt.u32.totalorder %s3851_s30, %s4615_s1 }
   0x8   :  { %p3857_p2 = pnand %p3855_p1, %p3852_p0 }
   0xa   :  { %3860 = shalt.err (!%p3857_p2)
}
   0xb   :  { %s3861_s12 = scalar_lea.vmem %s34_s25, 256  ;;  %p3866_p4 = scmp.lt.s32.totalorder %s34_s25, %s34_s25 }
   0xc   :  { %p3862_p3 = scmp.ne.s32.totalorder %s34_s25, %s3861_s12  ;;  %p3867_p5 = scmp.lt.s32.totalorder %s3861_s12, %s3861_s12 }
   0xe   :  { %p3868_p6 = por %p3867_p5, %p3866_p4 }
  0x10   :  { %p3869_p7 = pnand %p3868_p6, %p3862_p3 }
  0x12   :  { %3872 = shalt.err (!%p3869_p7)
}
  0x13   :  { %s3971_s13 = smov 128   ;;  %s3972_s14 = smov 8  }
  0x14   :  { %39 = dma.hbm_to_vmem [thread:$0]  %s4615_s1, 256, %s34_s25, [#allocation7], %s3971_s13, %s3971_s13, %s3972_s14  }
  0x15   :  { %s3873_s19 = scalar_lea.hbm %s4614_s0, 256 }
  0x16   :  { %p3874_p8 = scmp.ne.s32.totalorder %s4614_s0, %s3873_s19  ;;  %p3877_p9 = scmp.lt.u32.totalorder %s3873_s19, %s4614_s0 }
  0x18   :  { %p3879_p10 = pnand %p3877_p9, %p3874_p8 }
  0x1a   :  { %3882 = shalt.err (!%p3879_p10)
}
  0x1b   :  { %s3883_s24 = scalar_lea.vmem %s4022_s27, 256  ;;  %p3888_p12 = scmp.lt.s32.totalorder %s4022_s27, %s4022_s27 }
  0x1c   :  { %p3884_p11 = scmp.ne.s32.totalorder %s4022_s27, %s3883_s24  ;;  %p3889_p13 = scmp.lt.s32.totalorder %s3883_s24, %s3883_s24 }
  0x1e   :  { %p3890_p0 = por %p3889_p13, %p3888_p12 }
  0x20   :  { %p3891_p1 = pnand %p3890_p0, %p3884_p11 }
  0x22   :  { %3894 = shalt.err (!%p3891_p1)
}
  0x23   :  { %27 = dma.hbm_to_vmem [thread:$0]  %s4614_s0, 256, %s4022_s27, [#allocation4], %s3971_s13, %s3971_s13, %s3972_s14  }
  0x24   :  { %s3973_s26 = smov [#allocation8]   ;;  %s3974_s29 = smov [#allocation9]  }
  0x25   :  { %s45_s28 = sshll.u32 %s3973_s26, 4  ;;  %s61_s30 = sshll.u32 %s3974_s29, 4  ;;  %s46_s28 = int_to_ptr.vmem [resolvable:$true] %s45_s28  ;;  %s4059_s30 = int_to_ptr.vmem [resolvable:$true] %s61_s30 }
  0x26   :  { %s3895_s10 = scalar_lea.hbm %s4616_s2, 512 }
  0x27   :  { %p3896_p2 = scmp.ne.s32.totalorder %s4616_s2, %s3895_s10  ;;  %p3899_p3 = scmp.lt.u32.totalorder %s3895_s10, %s4616_s2 }
  0x29   :  { %p3901_p4 = pnand %p3899_p3, %p3896_p2 }
  0x2b   :  { %3904 = shalt.err (!%p3901_p4)
}
  0x2c   :  { %s3905_s0 = scalar_lea.vmem %s46_s28, 512  ;;  %p3910_p6 = scmp.lt.s32.totalorder %s46_s28, %s46_s28 }
  0x2d   :  { %p3906_p5 = scmp.ne.s32.totalorder %s46_s28, %s3905_s0  ;;  %p3911_p7 = scmp.lt.s32.totalorder %s3905_s0, %s3905_s0 }
  0x2f   :  { %p3912_p8 = por %p3911_p7, %p3910_p6 }
  0x31   :  { %p3913_p9 = pnand %p3912_p8, %p3906_p5 }
  0x33   :  { %3916 = shalt.err (!%p3913_p9)
}
  0x34   :  { %51 = dma.hbm_to_vmem [thread:$0]  %s4616_s2, 512, %s46_s28, [#allocation7], %s3971_s13, %s3971_s13, %s3972_s14  }
  0x35   :  { %s3917_s20 = scalar_lea.hbm %s4619_s5, 512 }
  0x36   :  { %p3918_p10 = scmp.ne.s32.totalorder %s4619_s5, %s3917_s20  ;;  %p3921_p11 = scmp.lt.u32.totalorder %s3917_s20, %s4619_s5 }
  0x38   :  { %p3923_p12 = pnand %p3921_p11, %p3918_p10 }
  0x3a   :  { %3926 = shalt.err (!%p3923_p12)
}
  0x3b   :  { %s3927_s1 = scalar_lea.vmem %s4059_s30, 512  ;;  %p3932_p0 = scmp.lt.s32.totalorder %s4059_s30, %s4059_s30 }
  0x3c   :  { %p3928_p13 = scmp.ne.s32.totalorder %s4059_s30, %s3927_s1  ;;  %p3933_p1 = scmp.lt.s32.totalorder %s3927_s1, %s3927_s1 }
  0x3e   :  { %p3934_p2 = por %p3933_p1, %p3932_p0 }
  0x40   :  { %p3935_p3 = pnand %p3934_p2, %p3928_p13 }
  0x42   :  { %3938 = shalt.err (!%p3935_p3)
}
  0x43   :  { %67 = dma.hbm_to_vmem [thread:$0]  %s4619_s5, 512, %s4059_s30, [#allocation10], %s3971_s13, %s3971_s13, %s3972_s14  }
  0x44   :  { %3961 = dma.done.wait [#allocation4], 256  }
  0x45   :  { %3962 = vsyncadd [#allocation4], 4294967040 }
  0x46   :  { %3963 = dma.done.wait [#allocation7], 768  }
  0x47   :  { %3964 = vsyncadd [#allocation7], 4294966528 }
  0x48   :  { %3965 = dma.done.wait [#allocation10], 512  }
  0x49   :  { %3966 = vsyncadd [#allocation10], 4294966784  ;;  %v3975_v0 = vmov 0.0|0.0   ;;  %vm3976_vm0 = vmmov 0   ;;  %v3977_v1 = vmov 0.0   ;;  %v82_v2 = vld [vmem:[#allocation6] sm:$0xff] }
  0x4a   :  { %3471 = vmatprep.subr.bf16.mxu0 %v3975_v0  ;;  %3474 = vmatprep.subr.bf16.mxu1 %v3975_v0  ;;  %v83_v3 = vld [vmem:[#allocation6 + $0x8] sm:$0xff]  ;;  %v86_v5 = vld [vmem:[#allocation8] sm:$0xff]  ;;  %v87_v6 = vld [vmem:[#allocation8 + $0x8] sm:$0xff]  ;;  %vm105_vm1 = vcmask 130048   ;;  %s3978_s28 = smov 64   ;;  %vm394_vm2 = vcmask 1041409  }
  0x4b   :  { %3197 = vmatprep.mubr.msk.f32.mxu0 %vm3976_vm0, %v3977_v1  ;;  %3204 = vmatprep.mubr.msk.f32.mxu1 %vm3976_vm0, %v3977_v1  ;;  %v3472_v4 = vpack.c.bf16 %v83_v3, %v82_v2  ;;  %v98_v7 = vld [vmem:[#allocation3] sm:$0xff]  ;;  %v181_v8 = vld [vmem:[#allocation3 + $0x8] sm:$0xff]  ;;  %v4102_v9 = vpack.c.bf16 %v87_v6, %v86_v5  ;;  %v88_v10 = vld [vmem:[#allocation8 + $0x10] sm:$0xff]  ;;  %vm259_vm3 = vcmask 261120   ;;  %vm601_vm4 = vcmask 253952  }
  0x4c   :  { %v89_v11 = vld [vmem:[#allocation8 + $0x18] sm:$0xff]  ;;  %v3017_v13 = vld [vmem:[%s4617_s3] ss:$0 sm:$0xff]  ;;  %s3979_s3 = smov 32   ;;  %v96_v47 = vld [vmem:[%s4618_s4 + $0x10] sm:$0xff] }
  0x4d   :  { %3473 = vmatpush3.bf16.msra.mxu0 %v3472_v4  ;;  %3476 = vmatpush3.bf16.msra.mxu1 %v3472_v4  ;;  %v4107_v12 = vpack.c.bf16 %v89_v11, %v88_v10  ;;  %v94_v45 = vld [vmem:[%s4618_s4] sm:$0xff]  ;;  %v95_v46 = vld [vmem:[%s4618_s4 + $0x8] sm:$0xff]  ;;  %v97_v49 = vld [vmem:[%s4618_s4 + $0x18] sm:$0xff] }
  0x4e   :  { %3477 = vmatprep.subr.bf16.mxu1 %v3975_v0  ;;  %3495 = vmatprep.subr.bf16.mxu0 %v3975_v0  ;;  %v4145_v48 = vpack.c.bf16 %v95_v46, %v94_v45  ;;  %v4151_v50 = vpack.c.bf16 %v97_v49, %v96_v47  ;;  %v90_v59 = vld [vmem:[#allocation9] sm:$0xff]  ;;  %v91_v60 = vld [vmem:[#allocation9 + $0x8] sm:$0xff]  ;;  %v92_v62 = vld [vmem:[#allocation9 + $0x10] sm:$0xff] }
  0x4f   :  { %v4160_v61 = vpack.c.bf16 %v91_v60, %v90_v59  ;;  %v93_v63 = vld [vmem:[#allocation9 + $0x18] sm:$0xff] }
  0x50   :  { %3198 = vmatmul.mubr.msk.f32.vlgmr.msra.gmra.mrb[0].mxu0 %vm105_vm1, %v98_v7  ;;  %3205 = vmatmul.mubr.msk.f32.vlgmr.msra.gmra.mrb[0].mxu1 %vm105_vm1, %v181_v8  ;;  %v4165_v3 = vpack.c.bf16 %v93_v63, %v92_v62 }
  0x51   :  { %3479 = vmatpush3.bf16.msra.mxu1 %v4102_v9  ;;  %3215 = vmatprep.mubr.msk.f32.mxu1 %vm3976_vm0, %v3977_v1 }
  0x52   :  { %3480 = vmatprep.subr.bf16.mxu1 %v3975_v0  ;;  %3497 = vmatpush3.bf16.msra.mxu0 %v4102_v9 }
  0x53   :  { %3498 = vmatprep.subr.bf16.mxu0 %v3975_v0  ;;  %3248 = vmatprep.mubr.msk.f32.mxu0 %vm3976_vm0, %v3977_v1 }
  0x55   :  { %3482 = vmatpush3.bf16.msra.mxu1 %v4107_v12 }
  0x56   :  { %3483 = vmatprep.subr.bf16.mxu1 %v3975_v0  ;;  %3500 = vmatpush3.bf16.msra.mxu0 %v4107_v12 }
  0x57   :  { %3501 = vmatprep.subr.bf16.mxu0 %v3975_v0 }
  0x58   :  { %3216 = vmatmul.mubr.f32.vlgmr.msra.gmra.mrb[2].mxu1 %v3977_v1 }
  0x59   :  { %3226 = vmatprep.mubr.msk.f32.mxu1 %vm3976_vm0, %v3977_v1  ;;  %3485 = vmatpush3.bf16.msra.mxu1 %v4145_v48 }
  0x5a   :  { %3486 = vmatprep.subr.bf16.mxu1 %v3975_v0 }
  0x5d   :  { %3488 = vmatpush3.bf16.msra.mxu1 %v4151_v50 }
  0x5e   :  { %3489 = vmatprep.subr.bf16.mxu1 %v3975_v0 }
 0x123   :  { %v175_v14 = vpop.f32.mrb[0].mxu0  ;;  %v251_v15 = vpop.f32.mrb[0].mxu1 }
 0x124   :  { %v176_v16 = vadd.f32 %v3017_v13, %v175_v14  ;;  %v252_v17 = vadd.f32 %v3017_v13, %v251_v15  ;;  %v3206_v18 = vpop.f32.mrb[1].mxu1  ;;  %v3199_v19 = vpop.f32.mrb[1].mxu0  ;;  %v4188_v13 = vld [vmem:[%s4620_s6] ss:$0 sm:$0xff] }
 0x126   :  { %179 = vst [vmem:[#allocation2] sm:$0xff] %v176_v16  ;;  %256 = vst [vmem:[#allocation2 + $0x8] sm:$0xff] %v252_v17 }
 0x12b   :  { %v329_v20 = vpop.f32.mrb[2].mxu1 }
 0x12c   :  { %v334_v21 = vrot.slane %v329_v20, 1  ;;  %v3217_v22 = vpop.f32.mrb[3].mxu1 }
 0x12d   :  { %v258_v23 = vld [vmem:[#allocation2 + $0x8] sm:$0x1]  ;;  %v257_v24 = vld [vmem:[#allocation2] sm:$0x1]  ;;  %v604_v4 = vld [vmem:[#allocation2 + $0x1] sm:$0x1] }
 0x12e   :  { %v338_v25 = vadd.f32 %v334_v21, %v258_v23  ;;  %v337_v26 = vadd.f32 %v329_v20, %v257_v24  ;;  %v605_v10 = vld [vmem:[#allocation2 + $0x9] sm:$0x1]  ;;  %v946_v62 = vld [vmem:[#allocation2 + $0x2] sm:$0x1] }
 0x130   :  { %3658 = vtanh.f32 %v338_v25  ;;  %v3021_v29 = vmul.f32 -1.442695, %v338_v25  ;;  %v3020_v30 = vmul.f32 -1.442695, %v337_v26 }
 0x131   :  { %3660 = vtanh.f32 %v337_v26 }
 0x132   :  { %3662 = vpow2.f32 %v3021_v29 }
 0x133   :  { %3664 = vpow2.f32 %v3020_v30 }
 0x13a   :  { %v3659_v27 = vpop.eup %3658 }
 0x13b   :  { %357 = vrot.lane.b32.xlu0 %v3659_v27, %s3978_s28  ;;  %v3661_v28 = vpop.eup %3660 }
 0x13c   :  { %v3663_v31 = vpop.eup %3662 }
 0x13d   :  { %v346_v32 = vadd.f32 1.0, %v3663_v31  ;;  %v3665_v33 = vpop.eup %3664 }
 0x13e   :  { %v345_v34 = vadd.f32 1.0, %v3665_v33 }
 0x13f   :  { %355 = vrot.lane.b32.xlu0 %v3661_v28, %s3978_s28  ;;  %3666 = vrcp.f32 %v346_v32 }
 0x140   :  { %3668 = vrcp.f32 %v345_v34 }
 0x149   :  { %v3667_v35 = vpop.eup %3666 }
 0x14a   :  { %v3669_v38 = vpop.eup %3668 }
 0x1ad   :  { %v358_v36 = vpop.permute.xlu0 %357 }
 0x1ae   :  { %v362_v37 = vmul.f32 %v3667_v35, %v358_v36 }
 0x1b0   :  { %367 = vrot.lane.b32.xlu1 %v362_v37, %s3979_s3 }
 0x1b1   :  { %v356_v39 = vpop.permute.xlu0 %355 }
 0x1b2   :  { %v361_v40 = vmul.f32 %v3669_v38, %v356_v39 }
 0x1b4   :  { %365 = vrot.lane.b32.xlu1 %v361_v40, %s3979_s3 }
 0x222   :  { %v368_v41 = vpop.permute.xlu1 %367 }
 0x223   :  { %v4130_v42 = vadd.f32 %v3667_v35, %v368_v41 }
 0x225   :  { %3670 = vtanh.f32 %v4130_v42 }
 0x226   :  { %v366_v43 = vpop.permute.xlu1 %365 }
 0x227   :  { %v4133_v44 = vadd.f32 %v3669_v38, %v366_v43 }
 0x229   :  { %3672 = vtanh.f32 %v4133_v44 }
 0x22f   :  { %v3671_v51 = vpop.eup %3670 }
 0x230   :  { %379 = vrot.lane.b32.xlu0 %v3671_v51, %s3978_s28 }
 0x233   :  { %v3673_v52 = vpop.eup %3672 }
 0x234   :  { %377 = vrot.lane.b32.xlu1 %v3673_v52, %s3978_s28 }
 0x2a2   :  { %v380_v53 = vpop.permute.xlu0 %379 }
 0x2a3   :  { %v384_v54 = vmul.f32 %v3667_v35, %v380_v53 }
 0x2a5   :  { %v393_v56 = vrot.slane %v384_v54, 7 }
 0x2a6   :  { %v378_v55 = vpop.permute.xlu1 %377 }
 0x2a7   :  { %v383_v57 = vmul.f32 %v3669_v38, %v378_v55 }
 0x2a9   :  { %v395_v58 = vsel %vm394_vm2, %v393_v56, %v383_v57 }
 0x2aa   :  { %396 = vrot.lane.b32.xlu0 %v395_v58, %s3979_s3 }
 0x31c   :  { %v397_v2 = vpop.permute.xlu0 %396 }
 0x31d   :  { %3227 = vmatmul.mubr.msk.f32.vlgmr.msra.gmra.mrb[4].mxu1 %vm259_vm3, %v397_v2  ;;  %3249 = vmatmul.mubr.msk.f32.vlgmr.msra.gmra.mrb[2].mxu0 %vm259_vm3, %v397_v2 }
 0x31e   :  { %3491 = vmatpush3.bf16.msra.mxu1 %v4160_v61  ;;  %3237 = vmatprep.mubr.msk.f32.mxu1 %vm3976_vm0, %v3977_v1 }
 0x31f   :  { %3492 = vmatprep.subr.bf16.mxu1 %v3975_v0  ;;  %3503 = vmatpush3.bf16.msra.mxu0 %v4145_v48 }
 0x320   :  { %3504 = vmatprep.subr.bf16.mxu0 %v3975_v0  ;;  %3259 = vmatprep.mubr.msk.f32.mxu0 %vm3976_vm0, %v3977_v1 }
 0x322   :  { %3494 = vmatpush3.bf16.msra.mxu1 %v4165_v3 }
 0x323   :  { %3513 = vmatprep.subr.bf16.mxu1 %v3975_v0  ;;  %3506 = vmatpush3.bf16.msra.mxu0 %v4151_v50 }
 0x324   :  { %3507 = vmatprep.subr.bf16.mxu0 %v3975_v0 }
 0x325   :  { %3238 = vmatmul.mubr.f32.vlgmr.msra.gmra.mrb[4].mxu1 %v3977_v1 }
 0x326   :  { %3515 = vmatpush3.bf16.msra.mxu1 %v4102_v9  ;;  %3281 = vmatprep.mubr.msk.f32.mxu1 %vm3976_vm0, %v3977_v1 }
 0x327   :  { %3516 = vmatprep.subr.bf16.mxu1 %v3975_v0 }
 0x32a   :  { %3518 = vmatpush3.bf16.msra.mxu1 %v4107_v12 }
 0x32b   :  { %3519 = vmatprep.subr.bf16.mxu1 %v3975_v0 }
 0x3f0   :  { %v672_v5 = vpop.f32.mrb[2].mxu0 }
 0x3f1   :  { %v677_v6 = vrot.slane %v672_v5, 1  ;;  %v680_v7 = vadd.f32 %v672_v5, %v604_v4  ;;  %v3250_v8 = vpop.f32.mrb[3].mxu0 }
 0x3f3   :  { %v681_v11 = vadd.f32 %v677_v6, %v605_v10  ;;  %3674 = vtanh.f32 %v680_v7  ;;  %v3026_v20 = vmul.f32 -1.442695, %v680_v7  ;;  %v947_v6 = vld [vmem:[#allocation2 + $0xa] sm:$0x1] }
 0x3f5   :  { %3676 = vtanh.f32 %v681_v11  ;;  %v3027_v21 = vmul.f32 -1.442695, %v681_v11 }
 0x3f8   :  { %v536_v14 = vpop.f32.mrb[4].mxu1 }
 0x3f9   :  { %v3621_v15 = vadd.f32 %v4188_v13, %v536_v14  ;;  %v3239_v16 = vpop.f32.mrb[5].mxu1 }
 0x3fb   :  { %3678 = vtanh.f32 %v3621_v15  ;;  %v3024_v22 = vmul.f32 -1.442695, %v3621_v15 }
 0x3fc   :  { %3680 = vpow2.f32 %v3026_v20 }
 0x3fd   :  { %v3675_v17 = vpop.eup %3674  ;;  %3682 = vpow2.f32 %v3027_v21 }
 0x3fe   :  { %700 = vrot.lane.b32.xlu0 %v3675_v17, %s3978_s28  ;;  %3684 = vpow2.f32 %v3024_v22 }
 0x3ff   :  { %v3677_v18 = vpop.eup %3676 }
 0x400   :  { %702 = vrot.lane.b32.xlu1 %v3677_v18, %s3978_s28 }
 0x405   :  { %v3679_v19 = vpop.eup %3678 }
 0x406   :  { %549 = vrot.lane.b32.xlu1 %v3679_v19, %s3978_s28  ;;  %v3681_v23 = vpop.eup %3680 }
 0x407   :  { %v3683_v24 = vpop.eup %3682  ;;  %v688_v25 = vadd.f32 1.0, %v3681_v23 }
 0x408   :  { %v689_v26 = vadd.f32 1.0, %v3683_v24  ;;  %v3685_v27 = vpop.eup %3684 }
 0x409   :  { %3686 = vrcp.f32 %v688_v25  ;;  %v544_v28 = vadd.f32 1.0, %v3685_v27 }
 0x40a   :  { %3688 = vrcp.f32 %v689_v26 }
 0x40b   :  { %3690 = vrcp.f32 %v544_v28 }
 0x413   :  { %v3687_v29 = vpop.eup %3686 }
 0x414   :  { %v3689_v32 = vpop.eup %3688  ;;  %v696_v38 = vmul.f32 %v3687_v29, %v4133_v44 }
 0x415   :  { %v3691_v35 = vpop.eup %3690  ;;  %v697_v41 = vmul.f32 %v3689_v32, %v4130_v42 }
 0x470   :  { %v701_v30 = vpop.permute.xlu0 %700 }
 0x471   :  { %v706_v31 = vmul.f32 %v3687_v29, %v701_v30 }
 0x472   :  { %v703_v33 = vpop.permute.xlu1 %702 }
 0x473   :  { %710 = vrot.lane.b32.xlu1 %v706_v31, %s3979_s3  ;;  %v707_v34 = vmul.f32 %v3689_v32, %v703_v33 }
 0x475   :  { %712 = vrot.lane.b32.xlu0 %v707_v34, %s3979_s3 }
 0x478   :  { %v550_v36 = vpop.permute.xlu1 %549 }
 0x479   :  { %v552_v37 = vmul.f32 %v3691_v35, %v550_v36 }
 0x47b   :  { %554 = vrot.lane.b32.xlu0 %v552_v37, %s3979_s3 }
 0x4e5   :  { %v711_v39 = vpop.permute.xlu1 %710 }
 0x4e6   :  { %v4198_v40 = vadd.f32 %v711_v39, %v696_v38 }
 0x4e7   :  { %v713_v43 = vpop.permute.xlu0 %712 }
 0x4e8   :  { %3692 = vtanh.f32 %v4198_v40  ;;  %v4202_v45 = vadd.f32 %v713_v43, %v697_v41 }
 0x4ea   :  { %3694 = vtanh.f32 %v4202_v45 }
 0x4ed   :  { %v555_v46 = vpop.permute.xlu0 %554 }
 0x4ee   :  { %v4205_v47 = vadd.f32 %v3691_v35, %v555_v46 }
 0x4f0   :  { %3696 = vtanh.f32 %v4205_v47 }
 0x4f2   :  { %v3693_v49 = vpop.eup %3692 }
 0x4f3   :  { %722 = vrot.lane.b32.xlu0 %v3693_v49, %s3978_s28 }
 0x4f4   :  { %v3695_v44 = vpop.eup %3694 }
 0x4f5   :  { %724 = vrot.lane.b32.xlu1 %v3695_v44, %s3978_s28 }
 0x4fa   :  { %v3697_v51 = vpop.eup %3696 }
 0x4fb   :  { %560 = vrot.lane.b32.xlu1 %v3697_v51, %s3978_s28 }
 0x565   :  { %v723_v42 = vpop.permute.xlu0 %722 }
 0x566   :  { %v728_v54 = vmul.f32 %v3687_v29, %v723_v42 }
 0x567   :  { %v725_v52 = vpop.permute.xlu1 %724 }
 0x568   :  { %v729_v53 = vmul.f32 %v3689_v32, %v725_v52 }
 0x56a   :  { %v732_v55 = vrot.slane %v729_v53, 7 }
 0x56c   :  { %v733_v56 = vsel %vm394_vm2, %v732_v55, %v728_v54 }
 0x56d   :  { %v561_v57 = vpop.permute.xlu1 %560  ;;  %734 = vrot.lane.b32.xlu0 %v733_v56, %s3979_s3 }
 0x56e   :  { %v4213_v58 = vmul.f32 %v3691_v35, %v561_v57 }
 0x570   :  { %808 = vrot.lane.b32.xlu1 %v4213_v58, %s3979_s3 }
 0x5df   :  { %v735_v59 = vpop.permute.xlu0 %734 }
 0x5e0   :  { %3260 = vmatmul.mubr.msk.f32.vlgmr.msra.gmra.mrb[4].mxu0 %vm259_vm3, %v735_v59  ;;  %3282 = vmatmul.mubr.msk.f32.vlgmr.msra.gmra.mrb[6].mxu1 %vm259_vm3, %v735_v59 }
 0x5e1   :  { %3509 = vmatpush3.bf16.msra.mxu0 %v4160_v61  ;;  %3270 = vmatprep.mubr.msk.f32.mxu0 %vm3976_vm0, %v3977_v1 }
 0x5e2   :  { %3510 = vmatprep.subr.bf16.mxu0 %v3975_v0  ;;  %3521 = vmatpush3.bf16.msra.mxu1 %v4145_v48  ;;  %v809_v60 = vpop.permute.xlu1 %808 }
 0x5e3   :  { %3522 = vmatprep.subr.bf16.mxu1 %v3975_v0  ;;  %3292 = vmatprep.mubr.msk.f32.mxu1 %vm3976_vm0, %v3977_v1 }
 0x5e5   :  { %3512 = vmatpush3.bf16.msra.mxu0 %v4165_v3 }
 0x5e6   :  { %3531 = vmatprep.subr.bf16.mxu0 %v3975_v0  ;;  %3524 = vmatpush3.bf16.msra.mxu1 %v4151_v50 }
 0x5e7   :  { %3525 = vmatprep.subr.bf16.mxu1 %v3975_v0 }
 0x5e8   :  { %3271 = vmatmul.mubr.msk.f32.vlgmr.msra.gmra.mrb[4].mxu0 %vm259_vm3, %v809_v60  ;;  %v1288_v60 = vld [vmem:[#allocation2 + $0x3] sm:$0x1] }
 0x5e9   :  { %3533 = vmatpush3.bf16.msra.mxu0 %v4102_v9  ;;  %3314 = vmatprep.mubr.msk.f32.mxu0 %vm3976_vm0, %v3977_v1 }
 0x5ea   :  { %3534 = vmatprep.subr.bf16.mxu0 %v3975_v0 }
 0x5ed   :  { %3536 = vmatpush3.bf16.msra.mxu0 %v4107_v12 }
 0x5ee   :  { %3537 = vmatprep.subr.bf16.mxu0 %v3975_v0 }
 0x6b3   :  { %v1014_v63 = vpop.f32.mrb[6].mxu1 }
 0x6b4   :  { %v1019_v2 = vrot.slane %v1014_v63, 1  ;;  %v1022_v4 = vadd.f32 %v1014_v63, %v946_v62  ;;  %v3283_v5 = vpop.f32.mrb[7].mxu1 }
 0x6b5   :  { %v1289_v5 = vld [vmem:[#allocation2 + $0xb] sm:$0x1] }
 0x6b6   :  { %v1023_v7 = vadd.f32 %v1019_v2, %v947_v6  ;;  %3698 = vtanh.f32 %v1022_v4  ;;  %v3032_v17 = vmul.f32 -1.442695, %v1022_v4 }
 0x6b8   :  { %3700 = vtanh.f32 %v1023_v7  ;;  %v3033_v18 = vmul.f32 -1.442695, %v1023_v7 }
 0x6bb   :  { %v878_v8 = vpop.f32.mrb[4].mxu0 }
 0x6bc   :  { %v3622_v10 = vadd.f32 %v4188_v13, %v878_v8  ;;  %v3272_v11 = vpop.f32.mrb[5].mxu0 }
 0x6be   :  { %3702 = vtanh.f32 %v3622_v10  ;;  %v3030_v19 = vmul.f32 -1.442695, %v3622_v10 }
 0x6bf   :  { %3704 = vpow2.f32 %v3032_v17 }
 0x6c0   :  { %v3699_v14 = vpop.eup %3698  ;;  %3706 = vpow2.f32 %v3033_v18 }
 0x6c1   :  { %1042 = vrot.lane.b32.xlu1 %v3699_v14, %s3978_s28  ;;  %3708 = vpow2.f32 %v3030_v19 }
 0x6c2   :  { %v3701_v15 = vpop.eup %3700 }
 0x6c3   :  { %1044 = vrot.lane.b32.xlu0 %v3701_v15, %s3978_s28 }
 0x6c8   :  { %v3703_v16 = vpop.eup %3702 }
 0x6c9   :  { %892 = vrot.lane.b32.xlu0 %v3703_v16, %s3978_s28  ;;  %v3705_v20 = vpop.eup %3704 }
 0x6ca   :  { %v3707_v21 = vpop.eup %3706  ;;  %v1030_v22 = vadd.f32 1.0, %v3705_v20 }
 0x6cb   :  { %v1031_v23 = vadd.f32 1.0, %v3707_v21  ;;  %v3709_v24 = vpop.eup %3708 }
 0x6cc   :  { %3710 = vrcp.f32 %v1030_v22  ;;  %v886_v25 = vadd.f32 1.0, %v3709_v24 }
 0x6cd   :  { %3712 = vrcp.f32 %v1031_v23 }
 0x6ce   :  { %3714 = vrcp.f32 %v886_v25 }
 0x6d6   :  { %v3711_v26 = vpop.eup %3710 }
 0x6d7   :  { %v3713_v29 = vpop.eup %3712  ;;  %v1038_v35 = vmul.f32 %v3711_v26, %v4198_v40 }
 0x6d8   :  { %v3715_v32 = vpop.eup %3714  ;;  %v1039_v38 = vmul.f32 %v3713_v29, %v4202_v45 }
 0x6d9   :  { %v890_v43 = vmul.f32 %v3715_v32, %v4205_v47 }
 0x733   :  { %v1043_v27 = vpop.permute.xlu1 %1042 }
 0x734   :  { %v1048_v28 = vmul.f32 %v3711_v26, %v1043_v27 }
 0x735   :  { %v1045_v30 = vpop.permute.xlu0 %1044 }
 0x736   :  { %1052 = vrot.lane.b32.xlu0 %v1048_v28, %s3979_s3  ;;  %v1049_v31 = vmul.f32 %v3713_v29, %v1045_v30 }
 0x738   :  { %1054 = vrot.lane.b32.xlu1 %v1049_v31, %s3979_s3 }
 0x73b   :  { %v893_v33 = vpop.permute.xlu0 %892 }
 0x73c   :  { %v895_v34 = vmul.f32 %v3715_v32, %v893_v33 }
 0x73e   :  { %897 = vrot.lane.b32.xlu1 %v895_v34, %s3979_s3 }
 0x7a8   :  { %v1053_v36 = vpop.permute.xlu0 %1052 }
 0x7a9   :  { %v4246_v37 = vadd.f32 %v1053_v36, %v1038_v35 }
 0x7aa   :  { %v1055_v39 = vpop.permute.xlu1 %1054 }
 0x7ab   :  { %3716 = vtanh.f32 %v4246_v37  ;;  %v4250_v41 = vadd.f32 %v1055_v39, %v1039_v38 }
 0x7ad   :  { %3718 = vtanh.f32 %v4250_v41 }
 0x7b0   :  { %v898_v46 = vpop.permute.xlu1 %897 }
 0x7b1   :  { %v4254_v49 = vadd.f32 %v898_v46, %v890_v43 }
 0x7b3   :  { %3720 = vtanh.f32 %v4254_v49 }
 0x7b5   :  { %v3717_v40 = vpop.eup %3716 }
 0x7b6   :  { %1064 = vrot.lane.b32.xlu1 %v3717_v40, %s3978_s28 }
 0x7b7   :  { %v3719_v44 = vpop.eup %3718 }
 0x7b8   :  { %1066 = vrot.lane.b32.xlu0 %v3719_v44, %s3978_s28 }
 0x7bd   :  { %v3721_v45 = vpop.eup %3720 }
 0x7be   :  { %903 = vrot.lane.b32.xlu0 %v3721_v45, %s3978_s28 }
 0x828   :  { %v1065_v51 = vpop.permute.xlu1 %1064 }
 0x829   :  { %v1070_v53 = vmul.f32 %v3711_v26, %v1065_v51 }
 0x82a   :  { %v1067_v42 = vpop.permute.xlu0 %1066 }
 0x82b   :  { %v1071_v52 = vmul.f32 %v3713_v29, %v1067_v42 }
 0x82d   :  { %v1074_v54 = vrot.slane %v1071_v52, 7 }
 0x82f   :  { %v1075_v47 = vsel %vm394_vm2, %v1074_v54, %v1070_v53 }
 0x830   :  { %v904_v55 = vpop.permute.xlu0 %903  ;;  %1076 = vrot.lane.b32.xlu1 %v1075_v47, %s3979_s3 }
 0x831   :  { %v4262_v56 = vmul.f32 %v3715_v32, %v904_v55 }
 0x833   :  { %1150 = vrot.lane.b32.xlu0 %v4262_v56, %s3979_s3 }
 0x8a2   :  { %v1077_v57 = vpop.permute.xlu1 %1076 }
 0x8a3   :  { %3293 = vmatmul.mubr.msk.f32.vlgmr.msra.gmra.mrb[8].mxu1 %vm259_vm3, %v1077_v57  ;;  %3315 = vmatmul.mubr.msk.f32.vlgmr.msra.gmra.mrb[6].mxu0 %vm259_vm3, %v1077_v57 }
 0x8a4   :  { %3527 = vmatpush3.bf16.msra.mxu1 %v4160_v61  ;;  %3303 = vmatprep.mubr.msk.f32.mxu1 %vm3976_vm0, %v3977_v1 }
 0x8a5   :  { %3528 = vmatprep.subr.bf16.mxu1 %v3975_v0  ;;  %3539 = vmatpush3.bf16.msra.mxu0 %v4145_v48  ;;  %v1151_v59 = vpop.permute.xlu0 %1150 }
 0x8a6   :  { %3540 = vmatprep.subr.bf16.mxu0 %v3975_v0  ;;  %3325 = vmatprep.mubr.msk.f32.mxu0 %vm3976_vm0, %v3977_v1 }
 0x8a8   :  { %3530 = vmatpush3.bf16.msra.mxu1 %v4165_v3 }
 0x8a9   :  { %3549 = vmatprep.subr.bf16.mxu1 %v3975_v0  ;;  %3542 = vmatpush3.bf16.msra.mxu0 %v4151_v50 }
 0x8aa   :  { %3543 = vmatprep.subr.bf16.mxu0 %v3975_v0 }
 0x8ab   :  { %3304 = vmatmul.mubr.msk.f32.vlgmr.msra.gmra.mrb[8].mxu1 %vm259_vm3, %v1151_v59 }
 0x8ac   :  { %3551 = vmatpush3.bf16.msra.mxu1 %v4102_v9  ;;  %3347 = vmatprep.mubr.msk.f32.mxu1 %vm3976_vm0, %v3977_v1 }
 0x8ad   :  { %3552 = vmatprep.subr.bf16.mxu1 %v3975_v0 }
 0x8b0   :  { %3554 = vmatpush3.bf16.msra.mxu1 %v4107_v12 }
 0x8b1   :  { %3555 = vmatprep.subr.bf16.mxu1 %v3975_v0 }
 0x976   :  { %v1356_v62 = vpop.f32.mrb[6].mxu0 }
 0x977   :  { %v1361_v63 = vrot.slane %v1356_v62, 1  ;;  %v1364_v2 = vadd.f32 %v1356_v62, %v1288_v60  ;;  %v3316_v4 = vpop.f32.mrb[7].mxu0  ;;  %v1630_v60 = vld [vmem:[#allocation2 + $0x4] sm:$0x1] }
 0x979   :  { %v1365_v6 = vadd.f32 %v1361_v63, %v1289_v5  ;;  %3722 = vtanh.f32 %v1364_v2  ;;  %v3038_v16 = vmul.f32 -1.442695, %v1364_v2  ;;  %v1631_v5 = vld [vmem:[#allocation2 + $0xc] sm:$0x1] }
 0x97b   :  { %3724 = vtanh.f32 %v1365_v6  ;;  %v3039_v17 = vmul.f32 -1.442695, %v1365_v6 }
 0x97e   :  { %v1220_v7 = vpop.f32.mrb[8].mxu1 }
 0x97f   :  { %v3623_v8 = vadd.f32 %v4188_v13, %v1220_v7  ;;  %v3305_v10 = vpop.f32.mrb[9].mxu1 }
 0x981   :  { %3726 = vtanh.f32 %v3623_v8  ;;  %v3036_v18 = vmul.f32 -1.442695, %v3623_v8 }
 0x982   :  { %3728 = vpow2.f32 %v3038_v16 }
 0x983   :  { %v3723_v11 = vpop.eup %3722  ;;  %3730 = vpow2.f32 %v3039_v17 }
 0x984   :  { %1384 = vrot.lane.b32.xlu0 %v3723_v11, %s3978_s28  ;;  %3732 = vpow2.f32 %v3036_v18 }
 0x985   :  { %v3725_v14 = vpop.eup %3724 }
 0x986   :  { %1386 = vrot.lane.b32.xlu1 %v3725_v14, %s3978_s28 }
 0x98b   :  { %v3727_v15 = vpop.eup %3726 }
 0x98c   :  { %1234 = vrot.lane.b32.xlu1 %v3727_v15, %s3978_s28  ;;  %v3729_v19 = vpop.eup %3728 }
 0x98d   :  { %v3731_v20 = vpop.eup %3730  ;;  %v1372_v21 = vadd.f32 1.0, %v3729_v19 }
 0x98e   :  { %v1373_v22 = vadd.f32 1.0, %v3731_v20  ;;  %v3733_v23 = vpop.eup %3732 }
 0x98f   :  { %3734 = vrcp.f32 %v1372_v21  ;;  %v1228_v24 = vadd.f32 1.0, %v3733_v23 }
 0x990   :  { %3736 = vrcp.f32 %v1373_v22 }
 0x991   :  { %3738 = vrcp.f32 %v1228_v24 }
 0x999   :  { %v3735_v25 = vpop.eup %3734 }
 0x99a   :  { %v3737_v28 = vpop.eup %3736  ;;  %v1380_v34 = vmul.f32 %v3735_v25, %v4246_v37 }
 0x99b   :  { %v3739_v31 = vpop.eup %3738  ;;  %v1381_v38 = vmul.f32 %v3737_v28, %v4250_v41 }
 0x99c   :  { %v1232_v46 = vmul.f32 %v3739_v31, %v4254_v49 }
 0x9f6   :  { %v1385_v26 = vpop.permute.xlu0 %1384 }
 0x9f7   :  { %v1390_v27 = vmul.f32 %v3735_v25, %v1385_v26 }
 0x9f8   :  { %v1387_v29 = vpop.permute.xlu1 %1386 }
 0x9f9   :  { %1394 = vrot.lane.b32.xlu1 %v1390_v27, %s3979_s3  ;;  %v1391_v30 = vmul.f32 %v3737_v28, %v1387_v29 }
 0x9fb   :  { %1396 = vrot.lane.b32.xlu0 %v1391_v30, %s3979_s3 }
 0x9fe   :  { %v1235_v32 = vpop.permute.xlu1 %1234 }
 0x9ff   :  { %v1237_v33 = vmul.f32 %v3739_v31, %v1235_v32 }
 0xa01   :  { %1239 = vrot.lane.b32.xlu0 %v1237_v33, %s3979_s3 }
 0xa6b   :  { %v1395_v35 = vpop.permute.xlu1 %1394 }
 0xa6c   :  { %v4295_v36 = vadd.f32 %v1395_v35, %v1380_v34 }
 0xa6d   :  { %v1397_v39 = vpop.permute.xlu0 %1396 }
 0xa6e   :  { %3740 = vtanh.f32 %v4295_v36  ;;  %v4299_v43 = vadd.f32 %v1397_v39, %v1381_v38 }
 0xa70   :  { %3742 = vtanh.f32 %v4299_v43 }
 0xa73   :  { %v1240_v40 = vpop.permute.xlu0 %1239 }
 0xa74   :  { %v4303_v44 = vadd.f32 %v1240_v40, %v1232_v46 }
 0xa76   :  { %3744 = vtanh.f32 %v4303_v44 }
 0xa78   :  { %v3741_v37 = vpop.eup %3740 }
 0xa79   :  { %1406 = vrot.lane.b32.xlu0 %v3741_v37, %s3978_s28 }
 0xa7a   :  { %v3743_v45 = vpop.eup %3742 }
 0xa7b   :  { %1408 = vrot.lane.b32.xlu1 %v3743_v45, %s3978_s28 }
 0xa80   :  { %v3745_v41 = vpop.eup %3744 }
 0xa81   :  { %1245 = vrot.lane.b32.xlu1 %v3745_v41, %s3978_s28 }
 0xaeb   :  { %v1407_v51 = vpop.permute.xlu0 %1406 }
 0xaec   :  { %v1412_v53 = vmul.f32 %v3735_v25, %v1407_v51 }
 0xaed   :  { %v1409_v42 = vpop.permute.xlu1 %1408 }
 0xaee   :  { %v1413_v52 = vmul.f32 %v3737_v28, %v1409_v42 }
 0xaf0   :  { %v1416_v54 = vrot.slane %v1413_v52, 7 }
 0xaf2   :  { %v1417_v49 = vsel %vm394_vm2, %v1416_v54, %v1412_v53 }
 0xaf3   :  { %v1246_v47 = vpop.permute.xlu1 %1245  ;;  %1418 = vrot.lane.b32.xlu0 %v1417_v49, %s3979_s3 }
 0xaf4   :  { %v4311_v55 = vmul.f32 %v3739_v31, %v1246_v47 }
 0xaf6   :  { %1492 = vrot.lane.b32.xlu1 %v4311_v55, %s3979_s3 }
 0xb65   :  { %v1419_v57 = vpop.permute.xlu0 %1418 }
 0xb66   :  { %3326 = vmatmul.mubr.msk.f32.vlgmr.msra.gmra.mrb[8].mxu0 %vm259_vm3, %v1419_v57  ;;  %3348 = vmatmul.mubr.msk.f32.vlgmr.msra.gmra.mrb[10].mxu1 %vm259_vm3, %v1419_v57 }
 0xb67   :  { %3545 = vmatpush3.bf16.msra.mxu0 %v4160_v61  ;;  %3336 = vmatprep.mubr.msk.f32.mxu0 %vm3976_vm0, %v3977_v1 }
 0xb68   :  { %3546 = vmatprep.subr.bf16.mxu0 %v3975_v0  ;;  %3557 = vmatpush3.bf16.msra.mxu1 %v4145_v48  ;;  %v1493_v59 = vpop.permute.xlu1 %1492 }
 0xb69   :  { %3558 = vmatprep.subr.bf16.mxu1 %v3975_v0  ;;  %3358 = vmatprep.mubr.msk.f32.mxu1 %vm3976_vm0, %v3977_v1 }
 0xb6b   :  { %3548 = vmatpush3.bf16.msra.mxu0 %v4165_v3 }
 0xb6c   :  { %3567 = vmatprep.subr.bf16.mxu0 %v3975_v0  ;;  %3560 = vmatpush3.bf16.msra.mxu1 %v4151_v50 }
 0xb6d   :  { %3561 = vmatprep.subr.bf16.mxu1 %v3975_v0 }
 0xb6e   :  { %3337 = vmatmul.mubr.msk.f32.vlgmr.msra.gmra.mrb[8].mxu0 %vm259_vm3, %v1493_v59 }
 0xb6f   :  { %3569 = vmatpush3.bf16.msra.mxu0 %v4102_v9  ;;  %3380 = vmatprep.mubr.msk.f32.mxu0 %vm3976_vm0, %v3977_v1 }
 0xb70   :  { %3570 = vmatprep.subr.bf16.mxu0 %v3975_v0 }
 0xb73   :  { %3572 = vmatpush3.bf16.msra.mxu0 %v4107_v12 }
 0xb74   :  { %3573 = vmatprep.subr.bf16.mxu0 %v3975_v0 }
 0xc39   :  { %v1698_v62 = vpop.f32.mrb[10].mxu1 }
 0xc3a   :  { %v1703_v63 = vrot.slane %v1698_v62, 1  ;;  %v1706_v2 = vadd.f32 %v1698_v62, %v1630_v60  ;;  %v3349_v4 = vpop.f32.mrb[11].mxu1  ;;  %v1972_v62 = vld [vmem:[#allocation2 + $0x5] sm:$0x1] }
 0xc3c   :  { %v1707_v6 = vadd.f32 %v1703_v63, %v1631_v5  ;;  %3746 = vtanh.f32 %v1706_v2  ;;  %v3044_v16 = vmul.f32 -1.442695, %v1706_v2 }
 0xc3e   :  { %3748 = vtanh.f32 %v1707_v6  ;;  %v3045_v17 = vmul.f32 -1.442695, %v1707_v6  ;;  %v1973_v6 = vld [vmem:[#allocation2 + $0xd] sm:$0x1] }
 0xc41   :  { %v1562_v7 = vpop.f32.mrb[8].mxu0 }
 0xc42   :  { %v3624_v8 = vadd.f32 %v4188_v13, %v1562_v7  ;;  %v3338_v10 = vpop.f32.mrb[9].mxu0 }
 0xc44   :  { %3750 = vtanh.f32 %v3624_v8  ;;  %v3042_v18 = vmul.f32 -1.442695, %v3624_v8 }
 0xc45   :  { %3752 = vpow2.f32 %v3044_v16 }
 0xc46   :  { %v3747_v11 = vpop.eup %3746  ;;  %3754 = vpow2.f32 %v3045_v17 }
 0xc47   :  { %1726 = vrot.lane.b32.xlu1 %v3747_v11, %s3978_s28  ;;  %3756 = vpow2.f32 %v3042_v18 }
 0xc48   :  { %v3749_v14 = vpop.eup %3748 }
 0xc49   :  { %1728 = vrot.lane.b32.xlu0 %v3749_v14, %s3978_s28 }
 0xc4e   :  { %v3751_v15 = vpop.eup %3750 }
 0xc4f   :  { %1576 = vrot.lane.b32.xlu0 %v3751_v15, %s3978_s28  ;;  %v3753_v19 = vpop.eup %3752 }
 0xc50   :  { %v3755_v20 = vpop.eup %3754  ;;  %v1714_v21 = vadd.f32 1.0, %v3753_v19 }
 0xc51   :  { %v1715_v22 = vadd.f32 1.0, %v3755_v20  ;;  %v3757_v23 = vpop.eup %3756 }
 0xc52   :  { %3758 = vrcp.f32 %v1714_v21  ;;  %v1570_v24 = vadd.f32 1.0, %v3757_v23 }
 0xc53   :  { %3760 = vrcp.f32 %v1715_v22 }
 0xc54   :  { %3762 = vrcp.f32 %v1570_v24 }
 0xc5c   :  { %v3759_v25 = vpop.eup %3758 }
 0xc5d   :  { %v3761_v28 = vpop.eup %3760  ;;  %v1722_v34 = vmul.f32 %v3759_v25, %v4295_v36 }
 0xc5e   :  { %v3763_v31 = vpop.eup %3762  ;;  %v1723_v39 = vmul.f32 %v3761_v28, %v4299_v43 }
 0xc5f   :  { %v1574_v37 = vmul.f32 %v3763_v31, %v4303_v44 }
 0xcb9   :  { %v1727_v26 = vpop.permute.xlu1 %1726 }
 0xcba   :  { %v1732_v27 = vmul.f32 %v3759_v25, %v1727_v26 }
 0xcbb   :  { %v1729_v29 = vpop.permute.xlu0 %1728 }
 0xcbc   :  { %1736 = vrot.lane.b32.xlu0 %v1732_v27, %s3979_s3  ;;  %v1733_v30 = vmul.f32 %v3761_v28, %v1729_v29 }
 0xcbe   :  { %1738 = vrot.lane.b32.xlu1 %v1733_v30, %s3979_s3 }
 0xcc1   :  { %v1577_v32 = vpop.permute.xlu0 %1576 }
 0xcc2   :  { %v1579_v33 = vmul.f32 %v3763_v31, %v1577_v32 }
 0xcc4   :  { %1581 = vrot.lane.b32.xlu1 %v1579_v33, %s3979_s3 }
 0xd2e   :  { %v1737_v35 = vpop.permute.xlu0 %1736 }
 0xd2f   :  { %v4344_v38 = vadd.f32 %v1737_v35, %v1722_v34 }
 0xd30   :  { %v1739_v46 = vpop.permute.xlu1 %1738 }
 0xd31   :  { %3764 = vtanh.f32 %v4344_v38  ;;  %v4348_v40 = vadd.f32 %v1739_v46, %v1723_v39 }
 0xd33   :  { %3766 = vtanh.f32 %v4348_v40 }
 0xd36   :  { %v1582_v45 = vpop.permute.xlu1 %1581 }
 0xd37   :  { %v4352_v41 = vadd.f32 %v1582_v45, %v1574_v37 }
 0xd39   :  { %3768 = vtanh.f32 %v4352_v41 }
 0xd3b   :  { %v3765_v36 = vpop.eup %3764 }
 0xd3c   :  { %1748 = vrot.lane.b32.xlu1 %v3765_v36, %s3978_s28 }
 0xd3d   :  { %v3767_v51 = vpop.eup %3766 }
 0xd3e   :  { %1750 = vrot.lane.b32.xlu0 %v3767_v51, %s3978_s28 }
 0xd43   :  { %v3769_v43 = vpop.eup %3768 }
 0xd44   :  { %1587 = vrot.lane.b32.xlu0 %v3769_v43, %s3978_s28 }
 0xdae   :  { %v1749_v42 = vpop.permute.xlu1 %1748 }
 0xdaf   :  { %v1754_v54 = vmul.f32 %v3759_v25, %v1749_v42 }
 0xdb0   :  { %v1751_v52 = vpop.permute.xlu0 %1750 }
 0xdb1   :  { %v1755_v53 = vmul.f32 %v3761_v28, %v1751_v52 }
 0xdb3   :  { %v1758_v49 = vrot.slane %v1755_v53, 7 }
 0xdb5   :  { %v1759_v44 = vsel %vm394_vm2, %v1758_v49, %v1754_v54 }
 0xdb6   :  { %v1588_v47 = vpop.permute.xlu0 %1587  ;;  %1760 = vrot.lane.b32.xlu1 %v1759_v44, %s3979_s3 }
 0xdb7   :  { %v4360_v57 = vmul.f32 %v3763_v31, %v1588_v47 }
 0xdb9   :  { %1834 = vrot.lane.b32.xlu0 %v4360_v57, %s3979_s3 }
 0xe28   :  { %v1761_v59 = vpop.permute.xlu1 %1760 }
 0xe29   :  { %3359 = vmatmul.mubr.msk.f32.vlgmr.msra.gmra.mrb[12].mxu1 %vm259_vm3, %v1761_v59  ;;  %3381 = vmatmul.mubr.msk.f32.vlgmr.msra.gmra.mrb[10].mxu0 %vm259_vm3, %v1761_v59 }
 0xe2a   :  { %3563 = vmatpush3.bf16.msra.mxu1 %v4160_v61  ;;  %3369 = vmatprep.mubr.msk.f32.mxu1 %vm3976_vm0, %v3977_v1 }
 0xe2b   :  { %3564 = vmatprep.subr.bf16.mxu1 %v3975_v0  ;;  %3575 = vmatpush3.bf16.msra.mxu0 %v4145_v48  ;;  %v1835_v60 = vpop.permute.xlu0 %1834 }
 0xe2c   :  { %3576 = vmatprep.subr.bf16.mxu0 %v3975_v0  ;;  %3391 = vmatprep.mubr.msk.f32.mxu0 %vm3976_vm0, %v3977_v1 }
 0xe2e   :  { %3566 = vmatpush3.bf16.msra.mxu1 %v4165_v3 }
 0xe2f   :  { %3585 = vmatprep.subr.bf16.mxu1 %v3975_v0  ;;  %3578 = vmatpush3.bf16.msra.mxu0 %v4151_v50 }
 0xe30   :  { %3579 = vmatprep.subr.bf16.mxu0 %v3975_v0 }
 0xe31   :  { %3370 = vmatmul.mubr.msk.f32.vlgmr.msra.gmra.mrb[12].mxu1 %vm259_vm3, %v1835_v60 }
 0xe32   :  { %3587 = vmatpush3.bf16.msra.mxu1 %v4102_v9  ;;  %3413 = vmatprep.mubr.msk.f32.mxu1 %vm3976_vm0, %v3977_v1 }
 0xe33   :  { %3588 = vmatprep.subr.bf16.mxu1 %v3975_v0 }
 0xe36   :  { %3590 = vmatpush3.bf16.msra.mxu1 %v4107_v12 }
 0xe37   :  { %3591 = vmatprep.subr.bf16.mxu1 %v3975_v0 }
 0xefc   :  { %v2040_v63 = vpop.f32.mrb[10].mxu0 }
 0xefd   :  { %v2045_v2 = vrot.slane %v2040_v63, 1  ;;  %v2048_v4 = vadd.f32 %v2040_v63, %v1972_v62  ;;  %v3382_v5 = vpop.f32.mrb[11].mxu0 }
 0xeff   :  { %v2049_v7 = vadd.f32 %v2045_v2, %v1973_v6  ;;  %3770 = vtanh.f32 %v2048_v4  ;;  %v3050_v17 = vmul.f32 -1.442695, %v2048_v4  ;;  %v2314_v2 = vld [vmem:[#allocation2 + $0x6] sm:$0x1] }
 0xf01   :  { %3772 = vtanh.f32 %v2049_v7  ;;  %v3051_v18 = vmul.f32 -1.442695, %v2049_v7 }
 0xf04   :  { %v1904_v8 = vpop.f32.mrb[12].mxu1 }
 0xf05   :  { %v3625_v10 = vadd.f32 %v4188_v13, %v1904_v8  ;;  %v3371_v11 = vpop.f32.mrb[13].mxu1  ;;  %v2315_v8 = vld [vmem:[#allocation2 + $0xe] sm:$0x1] }
 0xf07   :  { %3774 = vtanh.f32 %v3625_v10  ;;  %v3048_v19 = vmul.f32 -1.442695, %v3625_v10 }
 0xf08   :  { %3776 = vpow2.f32 %v3050_v17 }
 0xf09   :  { %v3771_v14 = vpop.eup %3770  ;;  %3778 = vpow2.f32 %v3051_v18 }
 0xf0a   :  { %2068 = vrot.lane.b32.xlu0 %v3771_v14, %s3978_s28  ;;  %3780 = vpow2.f32 %v3048_v19 }
 0xf0b   :  { %v3773_v15 = vpop.eup %3772 }
 0xf0c   :  { %2070 = vrot.lane.b32.xlu1 %v3773_v15, %s3978_s28 }
 0xf11   :  { %v3775_v16 = vpop.eup %3774 }
 0xf12   :  { %1918 = vrot.lane.b32.xlu1 %v3775_v16, %s3978_s28  ;;  %v3777_v20 = vpop.eup %3776 }
 0xf13   :  { %v3779_v21 = vpop.eup %3778  ;;  %v2056_v22 = vadd.f32 1.0, %v3777_v20 }
 0xf14   :  { %v2057_v23 = vadd.f32 1.0, %v3779_v21  ;;  %v3781_v24 = vpop.eup %3780 }
 0xf15   :  { %3782 = vrcp.f32 %v2056_v22  ;;  %v1912_v25 = vadd.f32 1.0, %v3781_v24 }
 0xf16   :  { %3784 = vrcp.f32 %v2057_v23 }
 0xf17   :  { %3786 = vrcp.f32 %v1912_v25 }
 0xf1f   :  { %v3783_v26 = vpop.eup %3782 }
 0xf20   :  { %v3785_v29 = vpop.eup %3784  ;;  %v2064_v35 = vmul.f32 %v3783_v26, %v4344_v38 }
 0xf21   :  { %v3787_v32 = vpop.eup %3786  ;;  %v2065_v37 = vmul.f32 %v3785_v29, %v4348_v40 }
 0xf22   :  { %v1916_v51 = vmul.f32 %v3787_v32, %v4352_v41 }
 0xf7c   :  { %v2069_v27 = vpop.permute.xlu0 %2068 }
 0xf7d   :  { %v2074_v28 = vmul.f32 %v3783_v26, %v2069_v27 }
 0xf7e   :  { %v2071_v30 = vpop.permute.xlu1 %2070 }
 0xf7f   :  { %2078 = vrot.lane.b32.xlu1 %v2074_v28, %s3979_s3  ;;  %v2075_v31 = vmul.f32 %v3785_v29, %v2071_v30 }
 0xf81   :  { %2080 = vrot.lane.b32.xlu0 %v2075_v31, %s3979_s3 }
 0xf84   :  { %v1919_v33 = vpop.permute.xlu1 %1918 }
 0xf85   :  { %v1921_v34 = vmul.f32 %v3787_v32, %v1919_v33 }
 0xf87   :  { %1923 = vrot.lane.b32.xlu0 %v1921_v34, %s3979_s3 }
 0xff1   :  { %v2079_v39 = vpop.permute.xlu1 %2078 }
 0xff2   :  { %v4393_v46 = vadd.f32 %v2079_v39, %v2064_v35 }
 0xff3   :  { %v2081_v45 = vpop.permute.xlu0 %2080 }
 0xff4   :  { %3788 = vtanh.f32 %v4393_v46  ;;  %v4397_v36 = vadd.f32 %v2081_v45, %v2065_v37 }
 0xff6   :  { %3790 = vtanh.f32 %v4397_v36 }
 0xff9   :  { %v1924_v43 = vpop.permute.xlu0 %1923 }
 0xffa   :  { %v4401_v42 = vadd.f32 %v1924_v43, %v1916_v51 }
 0xffc   :  { %3792 = vtanh.f32 %v4401_v42 }
 0xffe   :  { %v3789_v38 = vpop.eup %3788 }
 0xfff   :  { %2090 = vrot.lane.b32.xlu0 %v3789_v38, %s3978_s28 }
0x1000   :  { %v3791_v52 = vpop.eup %3790 }
0x1001   :  { %2092 = vrot.lane.b32.xlu1 %v3791_v52, %s3978_s28 }
0x1006   :  { %v3793_v40 = vpop.eup %3792 }
0x1007   :  { %1929 = vrot.lane.b32.xlu1 %v3793_v40, %s3978_s28 }
0x1071   :  { %v2091_v53 = vpop.permute.xlu0 %2090 }
0x1072   :  { %v2096_v44 = vmul.f32 %v3783_v26, %v2091_v53 }
0x1073   :  { %v2093_v54 = vpop.permute.xlu1 %2092 }
0x1074   :  { %v2097_v49 = vmul.f32 %v3785_v29, %v2093_v54 }
0x1076   :  { %v2100_v47 = vrot.slane %v2097_v49, 7 }
0x1078   :  { %v2101_v41 = vsel %vm394_vm2, %v2100_v47, %v2096_v44 }
0x1079   :  { %v1930_v59 = vpop.permute.xlu1 %1929  ;;  %2102 = vrot.lane.b32.xlu0 %v2101_v41, %s3979_s3 }
0x107a   :  { %v4409_v60 = vmul.f32 %v3787_v32, %v1930_v59 }
0x107c   :  { %2176 = vrot.lane.b32.xlu1 %v4409_v60, %s3979_s3 }
0x10eb   :  { %v2103_v62 = vpop.permute.xlu0 %2102 }
0x10ec   :  { %3392 = vmatmul.mubr.msk.f32.vlgmr.msra.gmra.mrb[12].mxu0 %vm259_vm3, %v2103_v62  ;;  %3414 = vmatmul.mubr.msk.f32.vlgmr.msra.gmra.mrb[14].mxu1 %vm259_vm3, %v2103_v62 }
0x10ed   :  { %3581 = vmatpush3.bf16.msra.mxu0 %v4160_v61  ;;  %3402 = vmatprep.mubr.msk.f32.mxu0 %vm3976_vm0, %v3977_v1 }
0x10ee   :  { %3582 = vmatprep.subr.bf16.mxu0 %v3975_v0  ;;  %3593 = vmatpush3.bf16.msra.mxu1 %v4145_v48  ;;  %v2177_v63 = vpop.permute.xlu1 %2176 }
0x10ef   :  { %3594 = vmatprep.subr.bf16.mxu1 %v3975_v0  ;;  %3424 = vmatprep.mubr.msk.f32.mxu1 %vm3976_vm0, %v3977_v1 }
0x10f1   :  { %3584 = vmatpush3.bf16.msra.mxu0 %v4165_v3 }
0x10f2   :  { %3603 = vmatprep.subr.bf16.mxu0 %v3975_v0  ;;  %3596 = vmatpush3.bf16.msra.mxu1 %v4151_v50 }
0x10f3   :  { %3597 = vmatprep.subr.bf16.mxu1 %v3975_v0 }
0x10f4   :  { %3403 = vmatmul.mubr.msk.f32.vlgmr.msra.gmra.mrb[12].mxu0 %vm259_vm3, %v2177_v63 }
0x10f5   :  { %3605 = vmatpush3.bf16.msra.mxu0 %v4102_v9  ;;  %3446 = vmatprep.mubr.msk.f32.mxu0 %vm3976_vm0, %v3977_v1 }
0x10f6   :  { %3606 = vmatprep.subr.bf16.mxu0 %v3975_v0 }
0x10f9   :  { %3608 = vmatpush3.bf16.msra.mxu0 %v4107_v12 }
0x10fa   :  { %3609 = vmatprep.subr.bf16.mxu0 %v3975_v0 }
0x11bf   :  { %v2382_v4 = vpop.f32.mrb[14].mxu1 }
0x11c0   :  { %v2387_v5 = vrot.slane %v2382_v4, 1  ;;  %v2390_v6 = vadd.f32 %v2382_v4, %v2314_v2  ;;  %v3415_v7 = vpop.f32.mrb[15].mxu1  ;;  %v2656_v2 = vld [vmem:[#allocation2 + $0x7] sm:$0x1] }
0x11c2   :  { %v2391_v10 = vadd.f32 %v2387_v5, %v2315_v8  ;;  %3794 = vtanh.f32 %v2390_v6  ;;  %v3056_v17 = vmul.f32 -1.442695, %v2390_v6 }
0x11c4   :  { %3796 = vtanh.f32 %v2391_v10  ;;  %v3057_v18 = vmul.f32 -1.442695, %v2391_v10 }
0x11c7   :  { %v2246_v11 = vpop.f32.mrb[12].mxu0 }
0x11c8   :  { %v3626_v9 = vadd.f32 %v4188_v13, %v2246_v11  ;;  %v3404_v14 = vpop.f32.mrb[13].mxu0  ;;  %v4479_v11 = vld [vmem:[%s4620_s6] ss:$0 sm:$0xff]  ;;  %s3981_s6 = smov [#allocation11]  }
0x11c9   :  { %s3003_s17 = sshll.u32 %s3981_s6, 4  ;;  %s3004_s17 = int_to_ptr.vmem [resolvable:$true] %s3003_s17 }
0x11ca   :  { %3798 = vtanh.f32 %v3626_v9  ;;  %v3054_v19 = vmul.f32 -1.442695, %v3626_v9  ;;  %s3939_s18 = scalar_lea.vmem %s3004_s17, 256  ;;  %p3944_p5 = scmp.lt.s32.totalorder %s3004_s17, %s3004_s17 }
0x11cb   :  { %3800 = vpow2.f32 %v3056_v17  ;;  %p3940_p4 = scmp.ne.s32.totalorder %s3004_s17, %s3939_s18  ;;  %p3945_p6 = scmp.lt.s32.totalorder %s3939_s18, %s3939_s18 }
0x11cc   :  { %v3795_v15 = vpop.eup %3794  ;;  %3802 = vpow2.f32 %v3057_v18 }
0x11cd   :  { %2410 = vrot.lane.b32.xlu1 %v3795_v15, %s3978_s28  ;;  %3804 = vpow2.f32 %v3054_v19  ;;  %p3946_p7 = por %p3945_p6, %p3944_p5 }
0x11ce   :  { %v3797_v12 = vpop.eup %3796 }
0x11cf   :  { %2412 = vrot.lane.b32.xlu0 %v3797_v12, %s3978_s28  ;;  %p3947_p8 = pnand %p3946_p7, %p3940_p4 }
0x11d4   :  { %v3799_v16 = vpop.eup %3798 }
0x11d5   :  { %2260 = vrot.lane.b32.xlu0 %v3799_v16, %s3978_s28  ;;  %v3801_v20 = vpop.eup %3800 }
0x11d6   :  { %v3803_v21 = vpop.eup %3802  ;;  %v2398_v13 = vadd.f32 1.0, %v3801_v20 }
0x11d7   :  { %v2399_v22 = vadd.f32 1.0, %v3803_v21  ;;  %v3805_v23 = vpop.eup %3804 }
0x11d8   :  { %3806 = vrcp.f32 %v2398_v13  ;;  %v2254_v24 = vadd.f32 1.0, %v3805_v23 }
0x11d9   :  { %3808 = vrcp.f32 %v2399_v22 }
0x11da   :  { %3810 = vrcp.f32 %v2254_v24 }
0x11e2   :  { %v3807_v25 = vpop.eup %3806 }
0x11e3   :  { %v3809_v28 = vpop.eup %3808  ;;  %v2406_v34 = vmul.f32 %v3807_v25, %v4393_v46 }
0x11e4   :  { %v3811_v31 = vpop.eup %3810  ;;  %v2407_v37 = vmul.f32 %v3809_v28, %v4397_v36 }
0x11e5   :  { %v2258_v43 = vmul.f32 %v3811_v31, %v4401_v42 }
0x123f   :  { %v2411_v26 = vpop.permute.xlu1 %2410 }
0x1240   :  { %v2416_v27 = vmul.f32 %v3807_v25, %v2411_v26 }
0x1241   :  { %v2413_v29 = vpop.permute.xlu0 %2412 }
0x1242   :  { %2420 = vrot.lane.b32.xlu0 %v2416_v27, %s3979_s3  ;;  %v2417_v30 = vmul.f32 %v3809_v28, %v2413_v29 }
0x1244   :  { %2422 = vrot.lane.b32.xlu1 %v2417_v30, %s3979_s3 }
0x1247   :  { %v2261_v32 = vpop.permute.xlu0 %2260 }
0x1248   :  { %v2263_v33 = vmul.f32 %v3811_v31, %v2261_v32 }
0x124a   :  { %2265 = vrot.lane.b32.xlu1 %v2263_v33, %s3979_s3 }
0x12b4   :  { %v2421_v35 = vpop.permute.xlu0 %2420 }
0x12b5   :  { %v4442_v39 = vadd.f32 %v2421_v35, %v2406_v34 }
0x12b6   :  { %v2423_v45 = vpop.permute.xlu1 %2422 }
0x12b7   :  { %3812 = vtanh.f32 %v4442_v39  ;;  %v4446_v51 = vadd.f32 %v2423_v45, %v2407_v37 }
0x12b9   :  { %3814 = vtanh.f32 %v4446_v51 }
0x12bc   :  { %v2266_v38 = vpop.permute.xlu1 %2265 }
0x12bd   :  { %v4450_v52 = vadd.f32 %v2266_v38, %v2258_v43 }
0x12bf   :  { %3816 = vtanh.f32 %v4450_v52 }
0x12c1   :  { %v3813_v46 = vpop.eup %3812 }
0x12c2   :  { %2432 = vrot.lane.b32.xlu1 %v3813_v46, %s3978_s28 }
0x12c3   :  { %v3815_v40 = vpop.eup %3814 }
0x12c4   :  { %2434 = vrot.lane.b32.xlu0 %v3815_v40, %s3978_s28 }
0x12c9   :  { %v3817_v36 = vpop.eup %3816 }
0x12ca   :  { %2271 = vrot.lane.b32.xlu0 %v3817_v36, %s3978_s28 }
0x1334   :  { %v2433_v53 = vpop.permute.xlu1 %2432 }
0x1335   :  { %v2438_v44 = vmul.f32 %v3807_v25, %v2433_v53 }
0x1336   :  { %v2435_v54 = vpop.permute.xlu0 %2434 }
0x1337   :  { %v2439_v49 = vmul.f32 %v3809_v28, %v2435_v54 }
0x1339   :  { %v2442_v47 = vrot.slane %v2439_v49, 7 }
0x133b   :  { %v2443_v42 = vsel %vm394_vm2, %v2442_v47, %v2438_v44 }
0x133c   :  { %v2272_v41 = vpop.permute.xlu0 %2271  ;;  %2444 = vrot.lane.b32.xlu1 %v2443_v42, %s3979_s3 }
0x133d   :  { %v4458_v59 = vmul.f32 %v3811_v31, %v2272_v41 }
0x133f   :  { %2518 = vrot.lane.b32.xlu0 %v4458_v59, %s3979_s3 }
0x13ae   :  { %v2445_v62 = vpop.permute.xlu1 %2444 }
0x13af   :  { %3425 = vmatmul.mubr.msk.f32.vlgmr.msra.gmra.mrb[16].mxu1 %vm259_vm3, %v2445_v62  ;;  %3447 = vmatmul.mubr.msk.f32.vlgmr.msra.gmra.mrb[14].mxu0 %vm259_vm3, %v2445_v62 }
0x13b0   :  { %3599 = vmatpush3.bf16.msra.mxu1 %v4160_v61  ;;  %3435 = vmatprep.mubr.msk.f32.mxu1 %vm3976_vm0, %v3977_v1 }
0x13b1   :  { %3600 = vmatprep.subr.bf16.mxu1 %v3975_v0  ;;  %3611 = vmatpush3.bf16.msra.mxu0 %v4145_v48  ;;  %v2519_v63 = vpop.permute.xlu0 %2518  ;;  %v2657_v48 = vld [vmem:[#allocation2 + $0xf] sm:$0x1] }
0x13b2   :  { %3612 = vmatprep.subr.bf16.mxu0 %v3975_v0  ;;  %3457 = vmatprep.mubr.msk.f32.mxu0 %vm3976_vm0, %v3977_v1 }
0x13b4   :  { %3602 = vmatpush3.bf16.msra.mxu1 %v4165_v3 }
0x13b5   :  { %3614 = vmatpush3.bf16.msra.mxu0 %v4151_v50 }
0x13b6   :  { %3615 = vmatprep.subr.bf16.mxu0 %v3975_v0 }
0x13b7   :  { %3436 = vmatmul.mubr.msk.f32.vlgmr.msra.gmra.mrb[16].mxu1 %vm259_vm3, %v2519_v63 }
0x1482   :  { %v2724_v4 = vpop.f32.mrb[14].mxu0 }
0x1483   :  { %v2729_v5 = vrot.slane %v2724_v4, 1  ;;  %v2732_v6 = vadd.f32 %v2724_v4, %v2656_v2  ;;  %v3448_v7 = vpop.f32.mrb[15].mxu0 }
0x1485   :  { %v2733_v8 = vadd.f32 %v2729_v5, %v2657_v48  ;;  %3818 = vtanh.f32 %v2732_v6  ;;  %v3062_v16 = vmul.f32 -1.442695, %v2732_v6  ;;  %v3980_v48 = vmov 1966171168  }
0x1487   :  { %3820 = vtanh.f32 %v2733_v8  ;;  %v3063_v17 = vmul.f32 -1.442695, %v2733_v8  ;;  %v568_v8 = vlaneseq }
0x148a   :  { %v2588_v10 = vpop.f32.mrb[16].mxu1 }
0x148b   :  { %v3627_v50 = vadd.f32 %v4479_v11, %v2588_v10  ;;  %v3437_v9 = vpop.f32.mrb[17].mxu1 }
0x148d   :  { %3822 = vtanh.f32 %v3627_v50  ;;  %v3060_v18 = vmul.f32 -1.442695, %v3627_v50 }
0x148e   :  { %3824 = vpow2.f32 %v3062_v16 }
0x148f   :  { %v3819_v14 = vpop.eup %3818  ;;  %3826 = vpow2.f32 %v3063_v17 }
0x1490   :  { %2752 = vrot.lane.b32.xlu0 %v3819_v14, %s3978_s28  ;;  %3828 = vpow2.f32 %v3060_v18 }
0x1491   :  { %v3821_v15 = vpop.eup %3820 }
0x1492   :  { %2754 = vrot.lane.b32.xlu1 %v3821_v15, %s3978_s28 }
0x1497   :  { %v3823_v12 = vpop.eup %3822 }
0x1498   :  { %2602 = vrot.lane.b32.xlu1 %v3823_v12, %s3978_s28  ;;  %v3825_v19 = vpop.eup %3824 }
0x1499   :  { %v3827_v20 = vpop.eup %3826  ;;  %v2740_v21 = vadd.f32 1.0, %v3825_v19 }
0x149a   :  { %v2741_v13 = vadd.f32 1.0, %v3827_v20  ;;  %v3829_v22 = vpop.eup %3828 }
0x149b   :  { %3830 = vrcp.f32 %v2740_v21  ;;  %v2596_v23 = vadd.f32 1.0, %v3829_v22 }
0x149c   :  { %3832 = vrcp.f32 %v2741_v13 }
0x149d   :  { %3834 = vrcp.f32 %v2596_v23 }
0x14a5   :  { %v3831_v24 = vpop.eup %3830 }
0x14a6   :  { %v3833_v27 = vpop.eup %3832  ;;  %v2748_v33 = vmul.f32 %v3831_v24, %v4442_v39 }
0x14a7   :  { %v3835_v30 = vpop.eup %3834  ;;  %v2749_v37 = vmul.f32 %v3833_v27, %v4446_v51 }
0x14a8   :  { %v2600_v38 = vmul.f32 %v3835_v30, %v4450_v52 }
0x1502   :  { %v2753_v25 = vpop.permute.xlu0 %2752 }
0x1503   :  { %v2758_v26 = vmul.f32 %v3831_v24, %v2753_v25 }
0x1504   :  { %v2755_v28 = vpop.permute.xlu1 %2754 }
0x1505   :  { %2762 = vrot.lane.b32.xlu1 %v2758_v26, %s3979_s3  ;;  %v2759_v29 = vmul.f32 %v3833_v27, %v2755_v28 }
0x1507   :  { %2764 = vrot.lane.b32.xlu0 %v2759_v29, %s3979_s3 }
0x150a   :  { %v2603_v31 = vpop.permute.xlu1 %2602 }
0x150b   :  { %v2605_v32 = vmul.f32 %v3835_v30, %v2603_v31 }
0x150d   :  { %2607 = vrot.lane.b32.xlu0 %v2605_v32, %s3979_s3 }
0x1577   :  { %v2763_v34 = vpop.permute.xlu1 %2762 }
0x1578   :  { %v2768_v35 = vadd.f32 %v2763_v34, %v2748_v33 }
0x1579   :  { %v2765_v45 = vpop.permute.xlu0 %2764 }
0x157a   :  { %3836 = vtanh.f32 %v2768_v35  ;;  %v2769_v43 = vadd.f32 %v2765_v45, %v2749_v37 }
0x157c   :  { %3838 = vtanh.f32 %v2769_v43 }
0x157f   :  { %v2608_v46 = vpop.permute.xlu0 %2607 }
0x1580   :  { %v4491_v40 = vadd.f32 %v2608_v46, %v2600_v38 }
0x1582   :  { %3840 = vtanh.f32 %v4491_v40 }
0x1584   :  { %v3837_v36 = vpop.eup %3836 }
0x1585   :  { %2774 = vrot.lane.b32.xlu0 %v3837_v36, %s3978_s28 }
0x1586   :  { %v3839_v53 = vpop.eup %3838 }
0x1587   :  { %2776 = vrot.lane.b32.xlu1 %v3839_v53, %s3978_s28 }
0x158c   :  { %v3841_v39 = vpop.eup %3840 }
0x158d   :  { %2613 = vrot.lane.b32.xlu1 %v3841_v39, %s3978_s28 }
0x15f7   :  { %v2775_v51 = vpop.permute.xlu0 %2774 }
0x15f8   :  { %v2780_v44 = vmul.f32 %v3831_v24, %v2775_v51 }
0x15f9   :  { %v2777_v54 = vpop.permute.xlu1 %2776 }
0x15fa   :  { %v2781_v49 = vmul.f32 %v3833_v27, %v2777_v54 }
0x15fc   :  { %v2784_v47 = vrot.slane %v2781_v49, 7 }
0x15fe   :  { %v2785_v52 = vsel %vm394_vm2, %v2784_v47, %v2780_v44 }
0x15ff   :  { %v2614_v42 = vpop.permute.xlu1 %2613  ;;  %2786 = vrot.lane.b32.xlu0 %v2785_v52, %s3979_s3 }
0x1600   :  { %v2616_v41 = vmul.f32 %v3835_v30, %v2614_v42 }
0x1602   :  { %2860 = vrot.lane.b32.xlu1 %v2616_v41, %s3979_s3 }
0x1671   :  { %v2787_v62 = vpop.permute.xlu0 %2786 }
0x1672   :  { %3458 = vmatmul.mubr.msk.f32.vlgmr.msra.gmra.mrb[16].mxu0 %vm259_vm3, %v2787_v62 }
0x1673   :  { %3617 = vmatpush3.bf16.msra.mxu0 %v4160_v61  ;;  %3468 = vmatprep.mubr.msk.f32.mxu0 %vm3976_vm0, %v3977_v1  ;;  %v566_v1 = vunpack.c.l.s4 %v3980_v48 }
0x1674   :  { %3618 = vmatprep.subr.bf16.mxu0 %v3975_v0  ;;  %v2861_v63 = vpop.permute.xlu1 %2860 }
0x1675   :  { %v567_v10 = vunpack.c.0.s8 %v566_v1 }
0x1677   :  { %3620 = vmatpush3.bf16.msra.mxu0 %v4165_v3  ;;  %v569_v3 = vshrl.u32 %v568_v8, 7 }
0x1679   :  { %v4509_v50 = vsub.s32 %v567_v10, %v569_v3  ;;  %v4518_v16 = vsub.s32 0, %v569_v3 }
0x167a   :  { %3469 = vmatmul.mubr.msk.f32.vlgmr.msra.gmra.mrb[16].mxu0 %vm259_vm3, %v2861_v63 }
0x167b   :  { %v914_v12 = vrot.slane %v4262_v56, %v4509_v50  ;;  %v1256_v19 = vrot.slane %v4311_v55, %v4509_v50  ;;  %v1598_v56 = vrot.slane %v4360_v57, %v4509_v50  ;;  %v1940_v22 = vrot.slane %v4409_v60, %v4509_v50 }
0x167c   :  { %v2282_v24 = vrot.slane %v4458_v59, %v4509_v50  ;;  %v2624_v26 = vrot.slane %v2616_v41, %v4509_v50 }
0x167d   :  { %v922_v18 = vrot.slane %v914_v12, %v4509_v50  ;;  %v1264_v20 = vrot.slane %v1256_v19, %v4509_v50  ;;  %v1606_v13 = vrot.slane %v1598_v56, %v4509_v50  ;;  %v1948_v23 = vrot.slane %v1940_v22, %v4509_v50 }
0x167e   :  { %v2290_v25 = vrot.slane %v2282_v24, %v4509_v50  ;;  %v2632_v60 = vrot.slane %v2624_v26, %v4509_v50  ;;  %v915_v35 = vcombine.high %v914_v12, %v914_v12  ;;  %v1257_v38 = vcombine.high %v1256_v19, %v1256_v19 }
0x167f   :  { %v933_v21 = vrot.slane %v922_v18, %v4518_v16  ;;  %v1275_v55 = vrot.slane %v1264_v20, %v4518_v16  ;;  %v1617_v57 = vrot.slane %v1606_v13, %v4518_v16  ;;  %v1959_v27 = vrot.slane %v1948_v23, %v4518_v16 }
0x1680   :  { %v2301_v28 = vrot.slane %v2290_v25, %v4518_v16  ;;  %v2643_v59 = vrot.slane %v2632_v60, %v4518_v16  ;;  %v929_v36 = vrot.slane %v915_v35, %v4509_v50  ;;  %v1599_v53 = vcombine.high %v1598_v56, %v1598_v56 }
0x1681   :  { %v1271_v54 = vrot.slane %v1257_v38, %v4509_v50  ;;  %v1941_v49 = vcombine.high %v1940_v22, %v1940_v22  ;;  %v2283_v42 = vcombine.high %v2282_v24, %v2282_v24 }
0x1682   :  { %v937_v51 = vrot.slane %v929_v36, %v4518_v16  ;;  %v1613_v52 = vrot.slane %v1599_v53, %v4509_v50 }
0x1683   :  { %v1279_v47 = vrot.slane %v1271_v54, %v4518_v16  ;;  %v1955_v63 = vrot.slane %v1941_v49, %v4509_v50 }
0x1684   :  { %v1621_v62 = vrot.slane %v1613_v52, %v4518_v16 }
0x174d   :  { %v2930_v2 = vpop.f32.mrb[16].mxu0 }
0x174e   :  { %v3628_v4 = vadd.f32 %v4479_v11, %v2930_v2  ;;  %v3470_v5 = vpop.f32.mrb[17].mxu0  ;;  %v571_v11 = vrot.slane %v4213_v58, %v4509_v50  ;;  %v2297_v2 = vrot.slane %v2283_v42, %v4509_v50 }
0x174f   :  { %v1963_v5 = vrot.slane %v1955_v63, %v4518_v16 }
0x1750   :  { %3842 = vtanh.f32 %v3628_v4  ;;  %v3066_v7 = vmul.f32 -1.442695, %v3628_v4  ;;  %v579_v15 = vrot.slane %v571_v11, %v4509_v50  ;;  %v572_v33 = vcombine.high %v571_v11, %v571_v11 }
0x1751   :  { %v2625_v4 = vcombine.high %v2624_v26, %v2624_v26 }
0x1752   :  { %3844 = vpow2.f32 %v3066_v7  ;;  %v590_v58 = vrot.slane %v579_v15, %v4518_v16  ;;  %v586_v45 = vrot.slane %v572_v33, %v4509_v50  ;;  %v2305_v7 = vrot.slane %v2297_v2, %v4518_v16 }
0x175a   :  { %v3843_v6 = vpop.eup %3842 }
0x175b   :  { %2944 = vrot.lane.b32.xlu0 %v3843_v6, %s3978_s28  ;;  %v2639_v6 = vrot.slane %v2625_v4, %v4509_v50 }
0x175c   :  { %v3845_v61 = vpop.eup %3844 }
0x175d   :  { %v2938_v0 = vadd.f32 1.0, %v3845_v61  ;;  %v2647_v61 = vrot.slane %v2639_v6, %v4518_v16 }
0x175f   :  { %3846 = vrcp.f32 %v2938_v0 }
0x1769   :  { %v4513_v9 = vpop.eup %3846 }
0x176a   :  { %v2942_v29 = vmul.f32 %v4513_v9, %v4491_v40  ;;  %v594_v40 = vrot.slane %v586_v45, %v4518_v16 }
0x17cd   :  { %v2945_v14 = vpop.permute.xlu0 %2944 }
0x17ce   :  { %v2947_v17 = vmul.f32 %v4513_v9, %v2945_v14 }
0x17d0   :  { %2949 = vrot.lane.b32.xlu1 %v2947_v17, %s3979_s3 }
0x17d4   :  { %595 = vrot.lane.b32.xlu1 %v590_v58, %s3979_s3 }
0x17d8   :  { %938 = vrot.lane.b32.xlu1 %v933_v21, %s3979_s3 }
0x17dc   :  { %1280 = vrot.lane.b32.xlu1 %v1275_v55, %s3979_s3 }
0x17e0   :  { %1622 = vrot.lane.b32.xlu1 %v1617_v57, %s3979_s3 }
0x17e4   :  { %1964 = vrot.lane.b32.xlu1 %v1959_v27, %s3979_s3 }
0x17e8   :  { %2306 = vrot.lane.b32.xlu1 %v2301_v28, %s3979_s3 }
0x17ec   :  { %2648 = vrot.lane.b32.xlu1 %v2643_v59, %s3979_s3 }
0x1842   :  { %v2950_v30 = vpop.permute.xlu1 %2949 }
0x1843   :  { %v2952_v31 = vadd.f32 %v2950_v30, %v2942_v29 }
0x1845   :  { %3848 = vtanh.f32 %v2952_v31 }
0x1846   :  { %v596_v32 = vpop.permute.xlu1 %595 }
0x1847   :  { %602 = vst.msk [vmem:[#allocation11] sm:$0x1] %vm601_vm4, %v596_v32 }
0x184a   :  { %v939_v34 = vpop.permute.xlu1 %938 }
0x184b   :  { %944 = vst.msk [vmem:[#allocation11 + $0x1] sm:$0x1] %vm601_vm4, %v939_v34 }
0x184e   :  { %v1281_v37 = vpop.permute.xlu1 %1280 }
0x184f   :  { %v3849_v43 = vpop.eup %3848  ;;  %1286 = vst.msk [vmem:[#allocation11 + $0x2] sm:$0x1] %vm601_vm4, %v1281_v37 }
0x1850   :  { %2955 = vrot.lane.b32.xlu0 %v3849_v43, %s3978_s28 }
0x1852   :  { %v1623_v46 = vpop.permute.xlu1 %1622 }
0x1853   :  { %1628 = vst.msk [vmem:[#allocation11 + $0x3] sm:$0x1] %vm601_vm4, %v1623_v46 }
0x1854   :  { %597 = vrot.lane.b32.xlu0 %v594_v40, %s3979_s3 }
0x1856   :  { %v1965_v39 = vpop.permute.xlu1 %1964 }
0x1857   :  { %1970 = vst.msk [vmem:[#allocation11 + $0x4] sm:$0x1] %vm601_vm4, %v1965_v39 }
0x1858   :  { %940 = vrot.lane.b32.xlu0 %v937_v51, %s3979_s3 }
0x185a   :  { %v2307_v44 = vpop.permute.xlu1 %2306 }
0x185b   :  { %2312 = vst.msk [vmem:[#allocation11 + $0x5] sm:$0x1] %vm601_vm4, %v2307_v44 }
0x185c   :  { %1282 = vrot.lane.b32.xlu0 %v1279_v47, %s3979_s3 }
0x185e   :  { %v2649_v41 = vpop.permute.xlu1 %2648 }
0x185f   :  { %2654 = vst.msk [vmem:[#allocation11 + $0x6] sm:$0x1] %vm601_vm4, %v2649_v41 }
0x1860   :  { %1624 = vrot.lane.b32.xlu0 %v1621_v62, %s3979_s3 }
0x1864   :  { %1966 = vrot.lane.b32.xlu0 %v1963_v5, %s3979_s3 }
0x1868   :  { %2308 = vrot.lane.b32.xlu0 %v2305_v7, %s3979_s3 }
0x186c   :  { %2650 = vrot.lane.b32.xlu0 %v2647_v61, %s3979_s3 }
0x18c2   :  { %v2956_v48 = vpop.permute.xlu0 %2955 }
0x18c3   :  { %v2958_v1 = vmul.f32 %v4513_v9, %v2956_v48 }
0x18c5   :  { %v2966_v8 = vrot.slane %v2958_v1, %v4509_v50 }
0x18c6   :  { %v598_v0 = vpop.permute.xlu0 %597 }
0x18c7   :  { %v2967_v10 = vcombine.high %v2966_v8, %v2966_v8  ;;  %v2974_v3 = vrot.slane %v2966_v8, %v4509_v50  ;;  %603 = vst.msk [vmem:[#allocation11 + $0x8] sm:$0x1] %vm601_vm4, %v598_v0 }
0x18c9   :  { %v2981_v11 = vrot.slane %v2967_v10, %v4509_v50  ;;  %v2985_v14 = vrot.slane %v2974_v3, %v4518_v16 }
0x18ca   :  { %v941_v15 = vpop.permute.xlu0 %940 }
0x18cb   :  { %945 = vst.msk [vmem:[#allocation11 + $0x9] sm:$0x1] %vm601_vm4, %v941_v15  ;;  %2990 = vrot.lane.b32.xlu1 %v2985_v14, %s3979_s3  ;;  %v2989_v12 = vrot.slane %v2981_v11, %v4518_v16 }
0x18cd   :  { %2992 = vrot.lane.b32.xlu0 %v2989_v12, %s3979_s3 }
0x18ce   :  { %v1283_v9 = vpop.permute.xlu0 %1282 }
0x18cf   :  { %1287 = vst.msk [vmem:[#allocation11 + $0xa] sm:$0x1] %vm601_vm4, %v1283_v9 }
0x18d2   :  { %v1625_v17 = vpop.permute.xlu0 %1624 }
0x18d3   :  { %1629 = vst.msk [vmem:[#allocation11 + $0xb] sm:$0x1] %vm601_vm4, %v1625_v17 }
0x18d6   :  { %v1967_v18 = vpop.permute.xlu0 %1966 }
0x18d7   :  { %1971 = vst.msk [vmem:[#allocation11 + $0xc] sm:$0x1] %vm601_vm4, %v1967_v18 }
0x18da   :  { %v2309_v50 = vpop.permute.xlu0 %2308 }
0x18db   :  { %2313 = vst.msk [vmem:[#allocation11 + $0xd] sm:$0x1] %vm601_vm4, %v2309_v50 }
0x18de   :  { %v2651_v19 = vpop.permute.xlu0 %2650 }
0x18df   :  { %2655 = vst.msk [vmem:[#allocation11 + $0xe] sm:$0x1] %vm601_vm4, %v2651_v19 }
0x193d   :  { %v2991_v16 = vpop.permute.xlu1 %2990 }
0x193e   :  { %2996 = vst.msk [vmem:[#allocation11 + $0x7] sm:$0x1] %vm601_vm4, %v2991_v16 }
0x193f   :  { %v2993_v58 = vpop.permute.xlu0 %2992 }
0x1940   :  { %2997 = vst.msk [vmem:[#allocation11 + $0xf] sm:$0x1] %vm601_vm4, %v2993_v58 }
0x1941   :  { %3950 = shalt.err (!%p3947_p8)
}
0x1942   :  { %s3951_s21 = scalar_lea.hbm %s4621_s7, 256 }
0x1943   :  { %p3952_p9 = scmp.ne.s32.totalorder %s4621_s7, %s3951_s21  ;;  %p3955_p10 = scmp.lt.u32.totalorder %s3951_s21, %s4621_s7 }
0x1945   :  { %p3957_p11 = pnand %p3955_p10, %p3952_p9 }
0x1947   :  { %3960 = shalt.err (!%p3957_p11)
}
0x1948   :  { %3009 = dma.vmem_to_hbm [thread:$0]  %s3004_s17, 256, %s4621_s7, [#allocation5], %s3971_s13, %s3971_s13, %s3972_s14  }
0x1949   :  { %3967 = dma.done.wait [#allocation5], 256  }
0x194a   :  { %3968 = vsyncadd [#allocation5], 4294967040 }
0x194b   :  { %3013 = vsyncpa [#allocation4], 1 }
0x194c   :  { %3014 = vsyncpa [#allocation7], 1 }
0x194d   :  { %3015 = vsyncpa [#allocation10], 1 }
0x194e   :  { %3016 = vsyncpa [#allocation5], 1 }

</bundles_post_ra>
